<compile_context>
chip_gen: v5e
topology: v5e:2x2
jax: 0.10.0
libtpu: 0.0.40
codegen_flags: <defaults>
</compile_context>

<pallas_src>
import jax
import jax.numpy as jnp
import numpy as np
from jax import lax
from jax.experimental import pallas as pl
from jax.experimental.pallas import tpu as pltpu


# ------------------------------ fused forward kernel ------------------------------
def _make_fused_kernel(T, Bp, I, H, L):
    def kernel(*refs):
        x_ref = refs[0]                      # (T*Bp, I)   VMEM (batch padded to Bp)
        layer_refs = refs[1:1 + 4 * L]       # per layer: w_ih, w_hh, b_comb, b_hh_n (VMEM)
        wres_ref = refs[1 + 4 * L]           # (T,)  SMEM  resize weights
        bres_ref = refs[2 + 4 * L]           # (1,)  SMEM  resize bias
        out_ref = refs[3 + 4 * L]            # (Bp, H)     VMEM out
        hid_ref = refs[4 + 4 * L]            # (L, Bp, H)  VMEM out

        prev_seq = None                      # previous layer's per-step hiddens (live values)
        for l in range(L):
            wih_ref, whh_ref, bcomb_ref, bhhn_ref = layer_refs[4 * l: 4 * l + 4]
            whh = whh_ref[...]                                   # (H, 3H)
            bcomb = bcomb_ref[...]                               # (1, 3H)  b_ih + [b_hh_r, b_hh_z, 0]
            bhhn = jnp.broadcast_to(bhhn_ref[...], (Bp, H))      # hoisted broadcast of b_hh_n

            if l == 0:
                # Hoisted input projection for all timesteps: one MXU call.
                gx_all = jnp.dot(x_ref[...], wih_ref[...],
                                 preferred_element_type=jnp.float32) + bcomb
                gx_steps = [gx_all[t * Bp:(t + 1) * Bp, :] for t in range(T)]
            else:
                # Per-step projection keeps the wavefront dependence: step t of this layer
                # only depends on step t of the previous layer (not on its whole sequence).
                wih = wih_ref[...]                               # (H, 3H)
                gx_steps = [jnp.dot(prev_seq[t], wih,
                                    preferred_element_type=jnp.float32) + bcomb
                            for t in range(T)]

            is_last = (l == L - 1)
            h = jnp.zeros((Bp, H), jnp.float32)                  # 'zeroes' hidden init
            acc = jnp.zeros((Bp, H), jnp.float32) if is_last else None
            seq = []

            # Fully unrolled recurrence (T is small and static); statement order is
            # irrelevant inside the basic block -- the DAG already exposes the wavefront.
            # TODO(synk): pin whh in MXU weight registers across this loop via
            # pltpu.matmul_push_rhs / matmul_acc_lhs / matmul_pop (per-layer mxu_index on
            # v7x) once that explicit path is validated on all target generations.
            for t in range(T):
                gx = gx_steps[t]                                 # (Bp, 3H), biases pre-folded
                gh = jnp.dot(h, whh, preferred_element_type=jnp.float32)   # (Bp, 3H), no bias
                rz = jax.nn.sigmoid(gx[:, :2 * H] + gh[:, :2 * H])         # merged r,z sigmoid
                r = rz[:, :H]
                z = rz[:, H:]
                n = jnp.tanh(gx[:, 2 * H:] + r * (gh[:, 2 * H:] + bhhn))
                h = (1.0 - z) * n + z * h
                if is_last:
                    # Folded resize Linear(T, 1): out[b,h] = sum_t w[t]*seq[t,b,h] + bias
                    acc = acc + wres_ref[t] * h
                else:
                    seq.append(h)

            hid_ref[l] = h                                       # final hidden, written once
            if is_last:
                out_ref[...] = acc + bres_ref[0]
            prev_seq = seq

    return kernel


def encoder_rnn_forward(x, params):
    """x: (T, B, I) float32. Returns (outputs (B, H), hidden (L, B, H))."""
    T, B, I = x.shape
    L = len(params["layers"])
    H = params["layers"][0]["w_hh"].shape[0]
    Bp = max(8, ((B + 7) // 8) * 8)                 # sublane-aligned padded batch

    kernel = _make_fused_kernel(T, Bp, I, H, L)

    layer_args = []
    layer_specs = []
    for p in params["layers"]:
        b_ih, b_hh = p["b_ih"], p["b_hh"]
        # Fold b_hh for r,z gates into the hoisted input-projection bias; keep b_hh_n separate.
        b_comb = b_ih + jnp.concatenate(
            [b_hh[:, :2 * H], jnp.zeros_like(b_hh[:, 2 * H:])], axis=1)
        b_hh_n = b_hh[:, 2 * H:]
        layer_args += [p["w_ih"], p["w_hh"], b_comb, b_hh_n]
        layer_specs += [pl.BlockSpec(memory_space=pltpu.MemorySpace.VMEM)] * 4

    # Pad batch to Bp so per-timestep slices of the flattened slab are sublane-aligned.
    x_p = jnp.zeros((T, Bp, I), x.dtype).at[:, :B, :].set(x)
    x_flat = x_p.reshape(T * Bp, I)
    w_res = params["w_resize"].reshape(T)           # (T,) scalars -> SMEM
    b_res = params["b_resize"].reshape(1)           # (1,) scalar  -> SMEM

    out_shapes = (jax.ShapeDtypeStruct((Bp, H), jnp.float32),
                  jax.ShapeDtypeStruct((L, Bp, H), jnp.float32))

    out_p, hid_p = pl.pallas_call(
        kernel,
        out_shape=out_shapes,
        in_specs=[pl.BlockSpec(memory_space=pltpu.MemorySpace.VMEM)]          # x
                 + layer_specs                                                 # GRU weights
                 + [pl.BlockSpec(memory_space=pltpu.MemorySpace.SMEM),         # w_resize
                    pl.BlockSpec(memory_space=pltpu.MemorySpace.SMEM)],        # b_resize
        out_specs=(pl.BlockSpec(memory_space=pltpu.MemorySpace.VMEM),
                   pl.BlockSpec(memory_space=pltpu.MemorySpace.VMEM)),
    )(x_flat, *layer_args, w_res, b_res)

    return out_p[:B], hid_p[:, :B]


# ----------------------------- pure-JAX reference ----------------------------
def gru_layer_ref(x, h0, w_ih, w_hh, b_ih, b_hh):
    H = h0.shape[-1]

    def step(h, x_t):
        gx = x_t @ w_ih + b_ih[0]
        gh = h @ w_hh + b_hh[0]
        r = jax.nn.sigmoid(gx[:, :H] + gh[:, :H])
        z = jax.nn.sigmoid(gx[:, H:2 * H] + gh[:, H:2 * H])
        n = jnp.tanh(gx[:, 2 * H:] + r * gh[:, 2 * H:])
        h_new = (1.0 - z) * n + z * h
        return h_new, h_new

    h_fin, ys = lax.scan(step, h0, x)
    return ys, h_fin


def encoder_rnn_ref(x, params):
    T, B, _ = x.shape
    L = len(params["layers"])
    H = params["layers"][0]["w_hh"].shape[0]
    h0 = jnp.zeros((L, B, H), jnp.float32)
    seq = x
    finals = []
    for l in range(L):
        p = params["layers"][l]
        seq, hf = gru_layer_ref(seq, h0[l], p["w_ih"], p["w_hh"], p["b_ih"], p["b_hh"])
        finals.append(hf)
    hidden = jnp.stack(finals, axis=0)
    flat = seq.reshape(T, B * H).T                # (B*H, T)
    out = (flat @ params["w_resize"][0][:, None] + params["b_resize"][0, 0]).reshape(B, H)
    return out, hidden


# ----------------------------------- main ------------------------------------
if __name__ == "__main__":
    # Small shapes implied by the module:
    #   num_frames (T) = 8, batch (B) = 2, output_cnn_size (I) = 32,
    #   enc_size (H) = 32, enc_layers (L) = 2, rnn_type = 'gru', enc_init = 'zeroes'
    T, B, I, H, L = 8, 2, 32, 32, 2

    key = jax.random.PRNGKey(0)
    keys = jax.random.split(key, 4 * L + 3)
    k = iter(keys)

    scale = 1.0 / np.sqrt(H)
    layers = []
    in_dim = I
    for l in range(L):
        layers.append({
            "w_ih": jax.random.uniform(next(k), (in_dim, 3 * H), jnp.float32, -scale, scale),
            "w_hh": jax.random.uniform(next(k), (H, 3 * H), jnp.float32, -scale, scale),
            "b_ih": jax.random.uniform(next(k), (1, 3 * H), jnp.float32, -scale, scale),
            "b_hh": jax.random.uniform(next(k), (1, 3 * H), jnp.float32, -scale, scale),
        })
        in_dim = H
    params = {
        "layers": layers,
        "w_resize": jax.random.uniform(next(k), (1, T), jnp.float32, -1.0 / np.sqrt(T), 1.0 / np.sqrt(T)),
        "b_resize": jax.random.uniform(next(k), (1, 1), jnp.float32, -1.0 / np.sqrt(T), 1.0 / np.sqrt(T)),
    }

    x = jax.random.normal(next(k), (T, B, I), jnp.float32)

    outputs, hidden = jax.jit(encoder_rnn_forward)(x, params)
    jax.block_until_ready((outputs, hidden))

    ref_out, ref_hidden = encoder_rnn_ref(x, params)
    np.testing.assert_allclose(np.asarray(outputs), np.asarray(ref_out), rtol=1e-5, atol=1e-5)
    np.testing.assert_allclose(np.asarray(hidden), np.asarray(ref_hidden), rtol=1e-5, atol=1e-5)

    assert outputs.shape == (B, H) and hidden.shape == (L, B, H)
    print("KERNEL_OK")
</pallas_src>

<mosaic_0001>
module attributes {stable_mosaic.version = 11 : i64} {
  func.func @kernel(%arg0: memref<64x32xf32, #tpu.memory_space<vmem>>, %arg1: memref<32x96xf32, #tpu.memory_space<vmem>>, %arg2: memref<32x96xf32, #tpu.memory_space<vmem>>, %arg3: memref<1x96xf32, #tpu.memory_space<vmem>>, %arg4: memref<1x32xf32, #tpu.memory_space<vmem>>, %arg5: memref<32x96xf32, #tpu.memory_space<vmem>>, %arg6: memref<32x96xf32, #tpu.memory_space<vmem>>, %arg7: memref<1x96xf32, #tpu.memory_space<vmem>>, %arg8: memref<1x32xf32, #tpu.memory_space<vmem>>, %arg9: memref<8xf32, #tpu.memory_space<smem>>, %arg10: memref<1xf32, #tpu.memory_space<smem>>, %arg11: memref<8x32xf32, #tpu.memory_space<vmem>>, %arg12: memref<2x8x32xf32, #tpu.memory_space<vmem>>) attributes {dimension_semantics = [], scalar_prefetch = 0 : i64, scratch_operands = 0 : i64, tpu.core_type = #tpu.core_type<tc>} {
    %c0 = arith.constant 0 : index
    %c0_0 = arith.constant 0 : index
    %0 = vector.load %arg2[%c0, %c0_0] : memref<32x96xf32, #tpu.memory_space<vmem>>, vector<32x96xf32>
    %c0_1 = arith.constant 0 : index
    %c0_2 = arith.constant 0 : index
    %1 = vector.load %arg3[%c0_1, %c0_2] : memref<1x96xf32, #tpu.memory_space<vmem>>, vector<1x96xf32>
    %c0_3 = arith.constant 0 : index
    %c0_4 = arith.constant 0 : index
    %2 = vector.load %arg4[%c0_3, %c0_4] : memref<1x32xf32, #tpu.memory_space<vmem>>, vector<1x32xf32>
    %3 = vector.shape_cast %2 : vector<1x32xf32> to vector<1x32xf32>
    %4 = vector.broadcast %3 : vector<1x32xf32> to vector<8x32xf32>
    %c0_5 = arith.constant 0 : index
    %c0_6 = arith.constant 0 : index
    %5 = vector.load %arg0[%c0_5, %c0_6] : memref<64x32xf32, #tpu.memory_space<vmem>>, vector<64x32xf32>
    %c0_7 = arith.constant 0 : index
    %c0_8 = arith.constant 0 : index
    %6 = vector.load %arg1[%c0_7, %c0_8] : memref<32x96xf32, #tpu.memory_space<vmem>>, vector<32x96xf32>
    %cst = arith.constant dense<0.000000e+00> : vector<64x96xf32>
    %7 = tpu.matmul %5, %6, %cst {dimension_numbers = #tpu.dot_dimension_numbers<[1], [0], [0], [1], [0, 0, 1, 1], [], []>} : vector<64x32xf32>, vector<32x96xf32>, vector<64x96xf32> -> vector<64x96xf32>
    %8 = vector.broadcast %1 : vector<1x96xf32> to vector<64x96xf32>
    %9 = arith.addf %7, %8 : vector<64x96xf32>
    %10 = vector.extract_strided_slice %9 {offsets = [0, 0], sizes = [8, 96], strides = [1, 1]} : vector<64x96xf32> to vector<8x96xf32>
    %11 = vector.extract_strided_slice %9 {offsets = [8, 0], sizes = [8, 96], strides = [1, 1]} : vector<64x96xf32> to vector<8x96xf32>
    %12 = vector.extract_strided_slice %9 {offsets = [16, 0], sizes = [8, 96], strides = [1, 1]} : vector<64x96xf32> to vector<8x96xf32>
    %13 = vector.extract_strided_slice %9 {offsets = [24, 0], sizes = [8, 96], strides = [1, 1]} : vector<64x96xf32> to vector<8x96xf32>
    %14 = vector.extract_strided_slice %9 {offsets = [32, 0], sizes = [8, 96], strides = [1, 1]} : vector<64x96xf32> to vector<8x96xf32>
    %15 = vector.extract_strided_slice %9 {offsets = [40, 0], sizes = [8, 96], strides = [1, 1]} : vector<64x96xf32> to vector<8x96xf32>
    %16 = vector.extract_strided_slice %9 {offsets = [48, 0], sizes = [8, 96], strides = [1, 1]} : vector<64x96xf32> to vector<8x96xf32>
    %17 = vector.extract_strided_slice %9 {offsets = [56, 0], sizes = [8, 96], strides = [1, 1]} : vector<64x96xf32> to vector<8x96xf32>
    %cst_9 = arith.constant 0.000000e+00 : f32
    %18 = vector.broadcast %cst_9 : f32 to vector<8x32xf32>
    %cst_10 = arith.constant dense<0.000000e+00> : vector<8x96xf32>
    %19 = tpu.matmul %18, %0, %cst_10 {dimension_numbers = #tpu.dot_dimension_numbers<[1], [0], [0], [1], [0, 0, 1, 1], [], []>} : vector<8x32xf32>, vector<32x96xf32>, vector<8x96xf32> -> vector<8x96xf32>
    %20 = vector.extract_strided_slice %10 {offsets = [0, 0], sizes = [8, 64], strides = [1, 1]} : vector<8x96xf32> to vector<8x64xf32>
    %21 = vector.extract_strided_slice %19 {offsets = [0, 0], sizes = [8, 64], strides = [1, 1]} : vector<8x96xf32> to vector<8x64xf32>
    %22 = arith.addf %20, %21 : vector<8x64xf32>
    %23 = arith.negf %22 : vector<8x64xf32>
    %24 = math.exp %23 : vector<8x64xf32>
    %cst_11 = arith.constant 1.000000e+00 : f32
    %25 = vector.broadcast %cst_11 : f32 to vector<8x64xf32>
    %26 = arith.addf %25, %24 : vector<8x64xf32>
    %27 = arith.divf %25, %26 : vector<8x64xf32>
    %28 = vector.extract_strided_slice %27 {offsets = [0, 0], sizes = [8, 32], strides = [1, 1]} : vector<8x64xf32> to vector<8x32xf32>
    %29 = vector.extract_strided_slice %27 {offsets = [0, 32], sizes = [8, 32], strides = [1, 1]} : vector<8x64xf32> to vector<8x32xf32>
    %30 = vector.extract_strided_slice %10 {offsets = [0, 64], sizes = [8, 32], strides = [1, 1]} : vector<8x96xf32> to vector<8x32xf32>
    %31 = vector.extract_strided_slice %19 {offsets = [0, 64], sizes = [8, 32], strides = [1, 1]} : vector<8x96xf32> to vector<8x32xf32>
    %32 = arith.addf %31, %4 : vector<8x32xf32>
    %33 = arith.mulf %28, %32 : vector<8x32xf32>
    %34 = arith.addf %30, %33 : vector<8x32xf32>
    %35 = math.tanh %34 : vector<8x32xf32>
    %cst_12 = arith.constant 1.000000e+00 : f32
    %36 = vector.broadcast %cst_12 : f32 to vector<8x32xf32>
    %37 = arith.subf %36, %29 : vector<8x32xf32>
    %38 = arith.mulf %37, %35 : vector<8x32xf32>
    %39 = arith.mulf %29, %18 : vector<8x32xf32>
    %40 = arith.addf %38, %39 : vector<8x32xf32>
    %cst_13 = arith.constant dense<0.000000e+00> : vector<8x96xf32>
    %41 = tpu.matmul %40, %0, %cst_13 {dimension_numbers = #tpu.dot_dimension_numbers<[1], [0], [0], [1], [0, 0, 1, 1], [], []>} : vector<8x32xf32>, vector<32x96xf32>, vector<8x96xf32> -> vector<8x96xf32>
    %42 = vector.extract_strided_slice %11 {offsets = [0, 0], sizes = [8, 64], strides = [1, 1]} : vector<8x96xf32> to vector<8x64xf32>
    %43 = vector.extract_strided_slice %41 {offsets = [0, 0], sizes = [8, 64], strides = [1, 1]} : vector<8x96xf32> to vector<8x64xf32>
    %44 = arith.addf %42, %43 : vector<8x64xf32>
    %45 = arith.negf %44 : vector<8x64xf32>
    %46 = math.exp %45 : vector<8x64xf32>
    %cst_14 = arith.constant 1.000000e+00 : f32
    %47 = vector.broadcast %cst_14 : f32 to vector<8x64xf32>
    %48 = arith.addf %47, %46 : vector<8x64xf32>
    %49 = arith.divf %47, %48 : vector<8x64xf32>
    %50 = vector.extract_strided_slice %49 {offsets = [0, 0], sizes = [8, 32], strides = [1, 1]} : vector<8x64xf32> to vector<8x32xf32>
    %51 = vector.extract_strided_slice %49 {offsets = [0, 32], sizes = [8, 32], strides = [1, 1]} : vector<8x64xf32> to vector<8x32xf32>
    %52 = vector.extract_strided_slice %11 {offsets = [0, 64], sizes = [8, 32], strides = [1, 1]} : vector<8x96xf32> to vector<8x32xf32>
    %53 = vector.extract_strided_slice %41 {offsets = [0, 64], sizes = [8, 32], strides = [1, 1]} : vector<8x96xf32> to vector<8x32xf32>
    %54 = arith.addf %53, %4 : vector<8x32xf32>
    %55 = arith.mulf %50, %54 : vector<8x32xf32>
    %56 = arith.addf %52, %55 : vector<8x32xf32>
    %57 = math.tanh %56 : vector<8x32xf32>
    %cst_15 = arith.constant 1.000000e+00 : f32
    %58 = vector.broadcast %cst_15 : f32 to vector<8x32xf32>
    %59 = arith.subf %58, %51 : vector<8x32xf32>
    %60 = arith.mulf %59, %57 : vector<8x32xf32>
    %61 = arith.mulf %51, %40 : vector<8x32xf32>
    %62 = arith.addf %60, %61 : vector<8x32xf32>
    %cst_16 = arith.constant dense<0.000000e+00> : vector<8x96xf32>
    %63 = tpu.matmul %62, %0, %cst_16 {dimension_numbers = #tpu.dot_dimension_numbers<[1], [0], [0], [1], [0, 0, 1, 1], [], []>} : vector<8x32xf32>, vector<32x96xf32>, vector<8x96xf32> -> vector<8x96xf32>
    %64 = vector.extract_strided_slice %12 {offsets = [0, 0], sizes = [8, 64], strides = [1, 1]} : vector<8x96xf32> to vector<8x64xf32>
    %65 = vector.extract_strided_slice %63 {offsets = [0, 0], sizes = [8, 64], strides = [1, 1]} : vector<8x96xf32> to vector<8x64xf32>
    %66 = arith.addf %64, %65 : vector<8x64xf32>
    %67 = arith.negf %66 : vector<8x64xf32>
    %68 = math.exp %67 : vector<8x64xf32>
    %cst_17 = arith.constant 1.000000e+00 : f32
    %69 = vector.broadcast %cst_17 : f32 to vector<8x64xf32>
    %70 = arith.addf %69, %68 : vector<8x64xf32>
    %71 = arith.divf %69, %70 : vector<8x64xf32>
    %72 = vector.extract_strided_slice %71 {offsets = [0, 0], sizes = [8, 32], strides = [1, 1]} : vector<8x64xf32> to vector<8x32xf32>
    %73 = vector.extract_strided_slice %71 {offsets = [0, 32], sizes = [8, 32], strides = [1, 1]} : vector<8x64xf32> to vector<8x32xf32>
    %74 = vector.extract_strided_slice %12 {offsets = [0, 64], sizes = [8, 32], strides = [1, 1]} : vector<8x96xf32> to vector<8x32xf32>
    %75 = vector.extract_strided_slice %63 {offsets = [0, 64], sizes = [8, 32], strides = [1, 1]} : vector<8x96xf32> to vector<8x32xf32>
    %76 = arith.addf %75, %4 : vector<8x32xf32>
    %77 = arith.mulf %72, %76 : vector<8x32xf32>
    %78 = arith.addf %74, %77 : vector<8x32xf32>
    %79 = math.tanh %78 : vector<8x32xf32>
    %cst_18 = arith.constant 1.000000e+00 : f32
    %80 = vector.broadcast %cst_18 : f32 to vector<8x32xf32>
    %81 = arith.subf %80, %73 : vector<8x32xf32>
    %82 = arith.mulf %81, %79 : vector<8x32xf32>
    %83 = arith.mulf %73, %62 : vector<8x32xf32>
    %84 = arith.addf %82, %83 : vector<8x32xf32>
    %cst_19 = arith.constant dense<0.000000e+00> : vector<8x96xf32>
    %85 = tpu.matmul %84, %0, %cst_19 {dimension_numbers = #tpu.dot_dimension_numbers<[1], [0], [0], [1], [0, 0, 1, 1], [], []>} : vector<8x32xf32>, vector<32x96xf32>, vector<8x96xf32> -> vector<8x96xf32>
    %86 = vector.extract_strided_slice %13 {offsets = [0, 0], sizes = [8, 64], strides = [1, 1]} : vector<8x96xf32> to vector<8x64xf32>
    %87 = vector.extract_strided_slice %85 {offsets = [0, 0], sizes = [8, 64], strides = [1, 1]} : vector<8x96xf32> to vector<8x64xf32>
    %88 = arith.addf %86, %87 : vector<8x64xf32>
    %89 = arith.negf %88 : vector<8x64xf32>
    %90 = math.exp %89 : vector<8x64xf32>
    %cst_20 = arith.constant 1.000000e+00 : f32
    %91 = vector.broadcast %cst_20 : f32 to vector<8x64xf32>
    %92 = arith.addf %91, %90 : vector<8x64xf32>
    %93 = arith.divf %91, %92 : vector<8x64xf32>
    %94 = vector.extract_strided_slice %93 {offsets = [0, 0], sizes = [8, 32], strides = [1, 1]} : vector<8x64xf32> to vector<8x32xf32>
    %95 = vector.extract_strided_slice %93 {offsets = [0, 32], sizes = [8, 32], strides = [1, 1]} : vector<8x64xf32> to vector<8x32xf32>
    %96 = vector.extract_strided_slice %13 {offsets = [0, 64], sizes = [8, 32], strides = [1, 1]} : vector<8x96xf32> to vector<8x32xf32>
    %97 = vector.extract_strided_slice %85 {offsets = [0, 64], sizes = [8, 32], strides = [1, 1]} : vector<8x96xf32> to vector<8x32xf32>
    %98 = arith.addf %97, %4 : vector<8x32xf32>
    %99 = arith.mulf %94, %98 : vector<8x32xf32>
    %100 = arith.addf %96, %99 : vector<8x32xf32>
    %101 = math.tanh %100 : vector<8x32xf32>
    %cst_21 = arith.constant 1.000000e+00 : f32
    %102 = vector.broadcast %cst_21 : f32 to vector<8x32xf32>
    %103 = arith.subf %102, %95 : vector<8x32xf32>
    %104 = arith.mulf %103, %101 : vector<8x32xf32>
    %105 = arith.mulf %95, %84 : vector<8x32xf32>
    %106 = arith.addf %104, %105 : vector<8x32xf32>
    %cst_22 = arith.constant dense<0.000000e+00> : vector<8x96xf32>
    %107 = tpu.matmul %106, %0, %cst_22 {dimension_numbers = #tpu.dot_dimension_numbers<[1], [0], [0], [1], [0, 0, 1, 1], [], []>} : vector<8x32xf32>, vector<32x96xf32>, vector<8x96xf32> -> vector<8x96xf32>
    %108 = vector.extract_strided_slice %14 {offsets = [0, 0], sizes = [8, 64], strides = [1, 1]} : vector<8x96xf32> to vector<8x64xf32>
    %109 = vector.extract_strided_slice %107 {offsets = [0, 0], sizes = [8, 64], strides = [1, 1]} : vector<8x96xf32> to vector<8x64xf32>
    %110 = arith.addf %108, %109 : vector<8x64xf32>
    %111 = arith.negf %110 : vector<8x64xf32>
    %112 = math.exp %111 : vector<8x64xf32>
    %cst_23 = arith.constant 1.000000e+00 : f32
    %113 = vector.broadcast %cst_23 : f32 to vector<8x64xf32>
    %114 = arith.addf %113, %112 : vector<8x64xf32>
    %115 = arith.divf %113, %114 : vector<8x64xf32>
    %116 = vector.extract_strided_slice %115 {offsets = [0, 0], sizes = [8, 32], strides = [1, 1]} : vector<8x64xf32> to vector<8x32xf32>
    %117 = vector.extract_strided_slice %115 {offsets = [0, 32], sizes = [8, 32], strides = [1, 1]} : vector<8x64xf32> to vector<8x32xf32>
    %118 = vector.extract_strided_slice %14 {offsets = [0, 64], sizes = [8, 32], strides = [1, 1]} : vector<8x96xf32> to vector<8x32xf32>
    %119 = vector.extract_strided_slice %107 {offsets = [0, 64], sizes = [8, 32], strides = [1, 1]} : vector<8x96xf32> to vector<8x32xf32>
    %120 = arith.addf %119, %4 : vector<8x32xf32>
    %121 = arith.mulf %116, %120 : vector<8x32xf32>
    %122 = arith.addf %118, %121 : vector<8x32xf32>
    %123 = math.tanh %122 : vector<8x32xf32>
    %cst_24 = arith.constant 1.000000e+00 : f32
    %124 = vector.broadcast %cst_24 : f32 to vector<8x32xf32>
    %125 = arith.subf %124, %117 : vector<8x32xf32>
    %126 = arith.mulf %125, %123 : vector<8x32xf32>
    %127 = arith.mulf %117, %106 : vector<8x32xf32>
    %128 = arith.addf %126, %127 : vector<8x32xf32>
    %cst_25 = arith.constant dense<0.000000e+00> : vector<8x96xf32>
    %129 = tpu.matmul %128, %0, %cst_25 {dimension_numbers = #tpu.dot_dimension_numbers<[1], [0], [0], [1], [0, 0, 1, 1], [], []>} : vector<8x32xf32>, vector<32x96xf32>, vector<8x96xf32> -> vector<8x96xf32>
    %130 = vector.extract_strided_slice %15 {offsets = [0, 0], sizes = [8, 64], strides = [1, 1]} : vector<8x96xf32> to vector<8x64xf32>
    %131 = vector.extract_strided_slice %129 {offsets = [0, 0], sizes = [8, 64], strides = [1, 1]} : vector<8x96xf32> to vector<8x64xf32>
    %132 = arith.addf %130, %131 : vector<8x64xf32>
    %133 = arith.negf %132 : vector<8x64xf32>
    %134 = math.exp %133 : vector<8x64xf32>
    %cst_26 = arith.constant 1.000000e+00 : f32
    %135 = vector.broadcast %cst_26 : f32 to vector<8x64xf32>
    %136 = arith.addf %135, %134 : vector<8x64xf32>
    %137 = arith.divf %135, %136 : vector<8x64xf32>
    %138 = vector.extract_strided_slice %137 {offsets = [0, 0], sizes = [8, 32], strides = [1, 1]} : vector<8x64xf32> to vector<8x32xf32>
    %139 = vector.extract_strided_slice %137 {offsets = [0, 32], sizes = [8, 32], strides = [1, 1]} : vector<8x64xf32> to vector<8x32xf32>
    %140 = vector.extract_strided_slice %15 {offsets = [0, 64], sizes = [8, 32], strides = [1, 1]} : vector<8x96xf32> to vector<8x32xf32>
    %141 = vector.extract_strided_slice %129 {offsets = [0, 64], sizes = [8, 32], strides = [1, 1]} : vector<8x96xf32> to vector<8x32xf32>
    %142 = arith.addf %141, %4 : vector<8x32xf32>
    %143 = arith.mulf %138, %142 : vector<8x32xf32>
    %144 = arith.addf %140, %143 : vector<8x32xf32>
    %145 = math.tanh %144 : vector<8x32xf32>
    %cst_27 = arith.constant 1.000000e+00 : f32
    %146 = vector.broadcast %cst_27 : f32 to vector<8x32xf32>
    %147 = arith.subf %146, %139 : vector<8x32xf32>
    %148 = arith.mulf %147, %145 : vector<8x32xf32>
    %149 = arith.mulf %139, %128 : vector<8x32xf32>
    %150 = arith.addf %148, %149 : vector<8x32xf32>
    %cst_28 = arith.constant dense<0.000000e+00> : vector<8x96xf32>
    %151 = tpu.matmul %150, %0, %cst_28 {dimension_numbers = #tpu.dot_dimension_numbers<[1], [0], [0], [1], [0, 0, 1, 1], [], []>} : vector<8x32xf32>, vector<32x96xf32>, vector<8x96xf32> -> vector<8x96xf32>
    %152 = vector.extract_strided_slice %16 {offsets = [0, 0], sizes = [8, 64], strides = [1, 1]} : vector<8x96xf32> to vector<8x64xf32>
    %153 = vector.extract_strided_slice %151 {offsets = [0, 0], sizes = [8, 64], strides = [1, 1]} : vector<8x96xf32> to vector<8x64xf32>
    %154 = arith.addf %152, %153 : vector<8x64xf32>
    %155 = arith.negf %154 : vector<8x64xf32>
    %156 = math.exp %155 : vector<8x64xf32>
    %cst_29 = arith.constant 1.000000e+00 : f32
    %157 = vector.broadcast %cst_29 : f32 to vector<8x64xf32>
    %158 = arith.addf %157, %156 : vector<8x64xf32>
    %159 = arith.divf %157, %158 : vector<8x64xf32>
    %160 = vector.extract_strided_slice %159 {offsets = [0, 0], sizes = [8, 32], strides = [1, 1]} : vector<8x64xf32> to vector<8x32xf32>
    %161 = vector.extract_strided_slice %159 {offsets = [0, 32], sizes = [8, 32], strides = [1, 1]} : vector<8x64xf32> to vector<8x32xf32>
    %162 = vector.extract_strided_slice %16 {offsets = [0, 64], sizes = [8, 32], strides = [1, 1]} : vector<8x96xf32> to vector<8x32xf32>
    %163 = vector.extract_strided_slice %151 {offsets = [0, 64], sizes = [8, 32], strides = [1, 1]} : vector<8x96xf32> to vector<8x32xf32>
    %164 = arith.addf %163, %4 : vector<8x32xf32>
    %165 = arith.mulf %160, %164 : vector<8x32xf32>
    %166 = arith.addf %162, %165 : vector<8x32xf32>
    %167 = math.tanh %166 : vector<8x32xf32>
    %cst_30 = arith.constant 1.000000e+00 : f32
    %168 = vector.broadcast %cst_30 : f32 to vector<8x32xf32>
    %169 = arith.subf %168, %161 : vector<8x32xf32>
    %170 = arith.mulf %169, %167 : vector<8x32xf32>
    %171 = arith.mulf %161, %150 : vector<8x32xf32>
    %172 = arith.addf %170, %171 : vector<8x32xf32>
    %cst_31 = arith.constant dense<0.000000e+00> : vector<8x96xf32>
    %173 = tpu.matmul %172, %0, %cst_31 {dimension_numbers = #tpu.dot_dimension_numbers<[1], [0], [0], [1], [0, 0, 1, 1], [], []>} : vector<8x32xf32>, vector<32x96xf32>, vector<8x96xf32> -> vector<8x96xf32>
    %174 = vector.extract_strided_slice %17 {offsets = [0, 0], sizes = [8, 64], strides = [1, 1]} : vector<8x96xf32> to vector<8x64xf32>
    %175 = vector.extract_strided_slice %173 {offsets = [0, 0], sizes = [8, 64], strides = [1, 1]} : vector<8x96xf32> to vector<8x64xf32>
    %176 = arith.addf %174, %175 : vector<8x64xf32>
    %177 = arith.negf %176 : vector<8x64xf32>
    %178 = math.exp %177 : vector<8x64xf32>
    %cst_32 = arith.constant 1.000000e+00 : f32
    %179 = vector.broadcast %cst_32 : f32 to vector<8x64xf32>
    %180 = arith.addf %179, %178 : vector<8x64xf32>
    %181 = arith.divf %179, %180 : vector<8x64xf32>
    %182 = vector.extract_strided_slice %181 {offsets = [0, 0], sizes = [8, 32], strides = [1, 1]} : vector<8x64xf32> to vector<8x32xf32>
    %183 = vector.extract_strided_slice %181 {offsets = [0, 32], sizes = [8, 32], strides = [1, 1]} : vector<8x64xf32> to vector<8x32xf32>
    %184 = vector.extract_strided_slice %17 {offsets = [0, 64], sizes = [8, 32], strides = [1, 1]} : vector<8x96xf32> to vector<8x32xf32>
    %185 = vector.extract_strided_slice %173 {offsets = [0, 64], sizes = [8, 32], strides = [1, 1]} : vector<8x96xf32> to vector<8x32xf32>
    %186 = arith.addf %185, %4 : vector<8x32xf32>
    %187 = arith.mulf %182, %186 : vector<8x32xf32>
    %188 = arith.addf %184, %187 : vector<8x32xf32>
    %189 = math.tanh %188 : vector<8x32xf32>
    %cst_33 = arith.constant 1.000000e+00 : f32
    %190 = vector.broadcast %cst_33 : f32 to vector<8x32xf32>
    %191 = arith.subf %190, %183 : vector<8x32xf32>
    %192 = arith.mulf %191, %189 : vector<8x32xf32>
    %193 = arith.mulf %183, %172 : vector<8x32xf32>
    %194 = arith.addf %192, %193 : vector<8x32xf32>
    %c0_34 = arith.constant 0 : index
    %c0_35 = arith.constant 0 : index
    %c0_36 = arith.constant 0 : index
    %195 = vector.load %arg12[%c0_34, %c0_35, %c0_36] : memref<2x8x32xf32, #tpu.memory_space<vmem>>, vector<1x8x32xf32>
    %196 = vector.shape_cast %195 : vector<1x8x32xf32> to vector<8x32xf32>
    %197 = vector.shape_cast %194 : vector<8x32xf32> to vector<1x8x32xf32>
    tpu.vector_store %arg12[%c0_34, %c0_35, %c0_36], %197 {strides = array<i32>} : memref<2x8x32xf32, #tpu.memory_space<vmem>>, vector<1x8x32xf32>,
    %c0_37 = arith.constant 0 : index
    %c0_38 = arith.constant 0 : index
    %198 = vector.load %arg6[%c0_37, %c0_38] : memref<32x96xf32, #tpu.memory_space<vmem>>, vector<32x96xf32>
    %c0_39 = arith.constant 0 : index
    %c0_40 = arith.constant 0 : index
    %199 = vector.load %arg7[%c0_39, %c0_40] : memref<1x96xf32, #tpu.memory_space<vmem>>, vector<1x96xf32>
    %c0_41 = arith.constant 0 : index
    %c0_42 = arith.constant 0 : index
    %200 = vector.load %arg8[%c0_41, %c0_42] : memref<1x32xf32, #tpu.memory_space<vmem>>, vector<1x32xf32>
    %201 = vector.shape_cast %200 : vector<1x32xf32> to vector<1x32xf32>
    %202 = vector.broadcast %201 : vector<1x32xf32> to vector<8x32xf32>
    %c0_43 = arith.constant 0 : index
    %c0_44 = arith.constant 0 : index
    %203 = vector.load %arg5[%c0_43, %c0_44] : memref<32x96xf32, #tpu.memory_space<vmem>>, vector<32x96xf32>
    %cst_45 = arith.constant dense<0.000000e+00> : vector<8x96xf32>
    %204 = tpu.matmul %40, %203, %cst_45 {dimension_numbers = #tpu.dot_dimension_numbers<[1], [0], [0], [1], [0, 0, 1, 1], [], []>} : vector<8x32xf32>, vector<32x96xf32>, vector<8x96xf32> -> vector<8x96xf32>
    %205 = vector.broadcast %199 : vector<1x96xf32> to vector<8x96xf32>
    %206 = arith.addf %204, %205 : vector<8x96xf32>
    %cst_46 = arith.constant dense<0.000000e+00> : vector<8x96xf32>
    %207 = tpu.matmul %62, %203, %cst_46 {dimension_numbers = #tpu.dot_dimension_numbers<[1], [0], [0], [1], [0, 0, 1, 1], [], []>} : vector<8x32xf32>, vector<32x96xf32>, vector<8x96xf32> -> vector<8x96xf32>
    %208 = vector.broadcast %199 : vector<1x96xf32> to vector<8x96xf32>
    %209 = arith.addf %207, %208 : vector<8x96xf32>
    %cst_47 = arith.constant dense<0.000000e+00> : vector<8x96xf32>
    %210 = tpu.matmul %84, %203, %cst_47 {dimension_numbers = #tpu.dot_dimension_numbers<[1], [0], [0], [1], [0, 0, 1, 1], [], []>} : vector<8x32xf32>, vector<32x96xf32>, vector<8x96xf32> -> vector<8x96xf32>
    %211 = vector.broadcast %199 : vector<1x96xf32> to vector<8x96xf32>
    %212 = arith.addf %210, %211 : vector<8x96xf32>
    %cst_48 = arith.constant dense<0.000000e+00> : vector<8x96xf32>
    %213 = tpu.matmul %106, %203, %cst_48 {dimension_numbers = #tpu.dot_dimension_numbers<[1], [0], [0], [1], [0, 0, 1, 1], [], []>} : vector<8x32xf32>, vector<32x96xf32>, vector<8x96xf32> -> vector<8x96xf32>
    %214 = vector.broadcast %199 : vector<1x96xf32> to vector<8x96xf32>
    %215 = arith.addf %213, %214 : vector<8x96xf32>
    %cst_49 = arith.constant dense<0.000000e+00> : vector<8x96xf32>
    %216 = tpu.matmul %128, %203, %cst_49 {dimension_numbers = #tpu.dot_dimension_numbers<[1], [0], [0], [1], [0, 0, 1, 1], [], []>} : vector<8x32xf32>, vector<32x96xf32>, vector<8x96xf32> -> vector<8x96xf32>
    %217 = vector.broadcast %199 : vector<1x96xf32> to vector<8x96xf32>
    %218 = arith.addf %216, %217 : vector<8x96xf32>
    %cst_50 = arith.constant dense<0.000000e+00> : vector<8x96xf32>
    %219 = tpu.matmul %150, %203, %cst_50 {dimension_numbers = #tpu.dot_dimension_numbers<[1], [0], [0], [1], [0, 0, 1, 1], [], []>} : vector<8x32xf32>, vector<32x96xf32>, vector<8x96xf32> -> vector<8x96xf32>
    %220 = vector.broadcast %199 : vector<1x96xf32> to vector<8x96xf32>
    %221 = arith.addf %219, %220 : vector<8x96xf32>
    %cst_51 = arith.constant dense<0.000000e+00> : vector<8x96xf32>
    %222 = tpu.matmul %172, %203, %cst_51 {dimension_numbers = #tpu.dot_dimension_numbers<[1], [0], [0], [1], [0, 0, 1, 1], [], []>} : vector<8x32xf32>, vector<32x96xf32>, vector<8x96xf32> -> vector<8x96xf32>
    %223 = vector.broadcast %199 : vector<1x96xf32> to vector<8x96xf32>
    %224 = arith.addf %222, %223 : vector<8x96xf32>
    %cst_52 = arith.constant dense<0.000000e+00> : vector<8x96xf32>
    %225 = tpu.matmul %194, %203, %cst_52 {dimension_numbers = #tpu.dot_dimension_numbers<[1], [0], [0], [1], [0, 0, 1, 1], [], []>} : vector<8x32xf32>, vector<32x96xf32>, vector<8x96xf32> -> vector<8x96xf32>
    %226 = vector.broadcast %199 : vector<1x96xf32> to vector<8x96xf32>
    %227 = arith.addf %225, %226 : vector<8x96xf32>
    %cst_53 = arith.constant 0.000000e+00 : f32
    %228 = vector.broadcast %cst_53 : f32 to vector<8x32xf32>
    %cst_54 = arith.constant 0.000000e+00 : f32
    %229 = vector.broadcast %cst_54 : f32 to vector<8x32xf32>
    %cst_55 = arith.constant dense<0.000000e+00> : vector<8x96xf32>
    %230 = tpu.matmul %228, %198, %cst_55 {dimension_numbers = #tpu.dot_dimension_numbers<[1], [0], [0], [1], [0, 0, 1, 1], [], []>} : vector<8x32xf32>, vector<32x96xf32>, vector<8x96xf32> -> vector<8x96xf32>
    %231 = vector.extract_strided_slice %206 {offsets = [0, 0], sizes = [8, 64], strides = [1, 1]} : vector<8x96xf32> to vector<8x64xf32>
    %232 = vector.extract_strided_slice %230 {offsets = [0, 0], sizes = [8, 64], strides = [1, 1]} : vector<8x96xf32> to vector<8x64xf32>
    %233 = arith.addf %231, %232 : vector<8x64xf32>
    %234 = arith.negf %233 : vector<8x64xf32>
    %235 = math.exp %234 : vector<8x64xf32>
    %cst_56 = arith.constant 1.000000e+00 : f32
    %236 = vector.broadcast %cst_56 : f32 to vector<8x64xf32>
    %237 = arith.addf %236, %235 : vector<8x64xf32>
    %238 = arith.divf %236, %237 : vector<8x64xf32>
    %239 = vector.extract_strided_slice %238 {offsets = [0, 0], sizes = [8, 32], strides = [1, 1]} : vector<8x64xf32> to vector<8x32xf32>
    %240 = vector.extract_strided_slice %238 {offsets = [0, 32], sizes = [8, 32], strides = [1, 1]} : vector<8x64xf32> to vector<8x32xf32>
    %241 = vector.extract_strided_slice %206 {offsets = [0, 64], sizes = [8, 32], strides = [1, 1]} : vector<8x96xf32> to vector<8x32xf32>
    %242 = vector.extract_strided_slice %230 {offsets = [0, 64], sizes = [8, 32], strides = [1, 1]} : vector<8x96xf32> to vector<8x32xf32>
    %243 = arith.addf %242, %202 : vector<8x32xf32>
    %244 = arith.mulf %239, %243 : vector<8x32xf32>
    %245 = arith.addf %241, %244 : vector<8x32xf32>
    %246 = math.tanh %245 : vector<8x32xf32>
    %cst_57 = arith.constant 1.000000e+00 : f32
    %247 = vector.broadcast %cst_57 : f32 to vector<8x32xf32>
    %248 = arith.subf %247, %240 : vector<8x32xf32>
    %249 = arith.mulf %248, %246 : vector<8x32xf32>
    %250 = arith.mulf %240, %228 : vector<8x32xf32>
    %251 = arith.addf %249, %250 : vector<8x32xf32>
    %c0_58 = arith.constant 0 : index
    %252 = memref.load %arg9[%c0_58] : memref<8xf32, #tpu.memory_space<smem>>
    %253 = vector.broadcast %252 : f32 to vector<8x32xf32>
    %254 = arith.mulf %253, %251 : vector<8x32xf32>
    %255 = arith.addf %229, %254 : vector<8x32xf32>
    %cst_59 = arith.constant dense<0.000000e+00> : vector<8x96xf32>
    %256 = tpu.matmul %251, %198, %cst_59 {dimension_numbers = #tpu.dot_dimension_numbers<[1], [0], [0], [1], [0, 0, 1, 1], [], []>} : vector<8x32xf32>, vector<32x96xf32>, vector<8x96xf32> -> vector<8x96xf32>
    %257 = vector.extract_strided_slice %209 {offsets = [0, 0], sizes = [8, 64], strides = [1, 1]} : vector<8x96xf32> to vector<8x64xf32>
    %258 = vector.extract_strided_slice %256 {offsets = [0, 0], sizes = [8, 64], strides = [1, 1]} : vector<8x96xf32> to vector<8x64xf32>
    %259 = arith.addf %257, %258 : vector<8x64xf32>
    %260 = arith.negf %259 : vector<8x64xf32>
    %261 = math.exp %260 : vector<8x64xf32>
    %cst_60 = arith.constant 1.000000e+00 : f32
    %262 = vector.broadcast %cst_60 : f32 to vector<8x64xf32>
    %263 = arith.addf %262, %261 : vector<8x64xf32>
    %264 = arith.divf %262, %263 : vector<8x64xf32>
    %265 = vector.extract_strided_slice %264 {offsets = [0, 0], sizes = [8, 32], strides = [1, 1]} : vector<8x64xf32> to vector<8x32xf32>
    %266 = vector.extract_strided_slice %264 {offsets = [0, 32], sizes = [8, 32], strides = [1, 1]} : vector<8x64xf32> to vector<8x32xf32>
    %267 = vector.extract_strided_slice %209 {offsets = [0, 64], sizes = [8, 32], strides = [1, 1]} : vector<8x96xf32> to vector<8x32xf32>
    %268 = vector.extract_strided_slice %256 {offsets = [0, 64], sizes = [8, 32], strides = [1, 1]} : vector<8x96xf32> to vector<8x32xf32>
    %269 = arith.addf %268, %202 : vector<8x32xf32>
    %270 = arith.mulf %265, %269 : vector<8x32xf32>
    %271 = arith.addf %267, %270 : vector<8x32xf32>
    %272 = math.tanh %271 : vector<8x32xf32>
    %cst_61 = arith.constant 1.000000e+00 : f32
    %273 = vector.broadcast %cst_61 : f32 to vector<8x32xf32>
    %274 = arith.subf %273, %266 : vector<8x32xf32>
    %275 = arith.mulf %274, %272 : vector<8x32xf32>
    %276 = arith.mulf %266, %251 : vector<8x32xf32>
    %277 = arith.addf %275, %276 : vector<8x32xf32>
    %c1 = arith.constant 1 : index
    %278 = memref.load %arg9[%c1] : memref<8xf32, #tpu.memory_space<smem>>
    %279 = vector.broadcast %278 : f32 to vector<8x32xf32>
    %280 = arith.mulf %279, %277 : vector<8x32xf32>
    %281 = arith.addf %255, %280 : vector<8x32xf32>
    %cst_62 = arith.constant dense<0.000000e+00> : vector<8x96xf32>
    %282 = tpu.matmul %277, %198, %cst_62 {dimension_numbers = #tpu.dot_dimension_numbers<[1], [0], [0], [1], [0, 0, 1, 1], [], []>} : vector<8x32xf32>, vector<32x96xf32>, vector<8x96xf32> -> vector<8x96xf32>
    %283 = vector.extract_strided_slice %212 {offsets = [0, 0], sizes = [8, 64], strides = [1, 1]} : vector<8x96xf32> to vector<8x64xf32>
    %284 = vector.extract_strided_slice %282 {offsets = [0, 0], sizes = [8, 64], strides = [1, 1]} : vector<8x96xf32> to vector<8x64xf32>
    %285 = arith.addf %283, %284 : vector<8x64xf32>
    %286 = arith.negf %285 : vector<8x64xf32>
    %287 = math.exp %286 : vector<8x64xf32>
    %cst_63 = arith.constant 1.000000e+00 : f32
    %288 = vector.broadcast %cst_63 : f32 to vector<8x64xf32>
    %289 = arith.addf %288, %287 : vector<8x64xf32>
    %290 = arith.divf %288, %289 : vector<8x64xf32>
    %291 = vector.extract_strided_slice %290 {offsets = [0, 0], sizes = [8, 32], strides = [1, 1]} : vector<8x64xf32> to vector<8x32xf32>
    %292 = vector.extract_strided_slice %290 {offsets = [0, 32], sizes = [8, 32], strides = [1, 1]} : vector<8x64xf32> to vector<8x32xf32>
    %293 = vector.extract_strided_slice %212 {offsets = [0, 64], sizes = [8, 32], strides = [1, 1]} : vector<8x96xf32> to vector<8x32xf32>
    %294 = vector.extract_strided_slice %282 {offsets = [0, 64], sizes = [8, 32], strides = [1, 1]} : vector<8x96xf32> to vector<8x32xf32>
    %295 = arith.addf %294, %202 : vector<8x32xf32>
    %296 = arith.mulf %291, %295 : vector<8x32xf32>
    %297 = arith.addf %293, %296 : vector<8x32xf32>
    %298 = math.tanh %297 : vector<8x32xf32>
    %cst_64 = arith.constant 1.000000e+00 : f32
    %299 = vector.broadcast %cst_64 : f32 to vector<8x32xf32>
    %300 = arith.subf %299, %292 : vector<8x32xf32>
    %301 = arith.mulf %300, %298 : vector<8x32xf32>
    %302 = arith.mulf %292, %277 : vector<8x32xf32>
    %303 = arith.addf %301, %302 : vector<8x32xf32>
    %c2 = arith.constant 2 : index
    %304 = memref.load %arg9[%c2] : memref<8xf32, #tpu.memory_space<smem>>
    %305 = vector.broadcast %304 : f32 to vector<8x32xf32>
    %306 = arith.mulf %305, %303 : vector<8x32xf32>
    %307 = arith.addf %281, %306 : vector<8x32xf32>
    %cst_65 = arith.constant dense<0.000000e+00> : vector<8x96xf32>
    %308 = tpu.matmul %303, %198, %cst_65 {dimension_numbers = #tpu.dot_dimension_numbers<[1], [0], [0], [1], [0, 0, 1, 1], [], []>} : vector<8x32xf32>, vector<32x96xf32>, vector<8x96xf32> -> vector<8x96xf32>
    %309 = vector.extract_strided_slice %215 {offsets = [0, 0], sizes = [8, 64], strides = [1, 1]} : vector<8x96xf32> to vector<8x64xf32>
    %310 = vector.extract_strided_slice %308 {offsets = [0, 0], sizes = [8, 64], strides = [1, 1]} : vector<8x96xf32> to vector<8x64xf32>
    %311 = arith.addf %309, %310 : vector<8x64xf32>
    %312 = arith.negf %311 : vector<8x64xf32>
    %313 = math.exp %312 : vector<8x64xf32>
    %cst_66 = arith.constant 1.000000e+00 : f32
    %314 = vector.broadcast %cst_66 : f32 to vector<8x64xf32>
    %315 = arith.addf %314, %313 : vector<8x64xf32>
    %316 = arith.divf %314, %315 : vector<8x64xf32>
    %317 = vector.extract_strided_slice %316 {offsets = [0, 0], sizes = [8, 32], strides = [1, 1]} : vector<8x64xf32> to vector<8x32xf32>
    %318 = vector.extract_strided_slice %316 {offsets = [0, 32], sizes = [8, 32], strides = [1, 1]} : vector<8x64xf32> to vector<8x32xf32>
    %319 = vector.extract_strided_slice %215 {offsets = [0, 64], sizes = [8, 32], strides = [1, 1]} : vector<8x96xf32> to vector<8x32xf32>
    %320 = vector.extract_strided_slice %308 {offsets = [0, 64], sizes = [8, 32], strides = [1, 1]} : vector<8x96xf32> to vector<8x32xf32>
    %321 = arith.addf %320, %202 : vector<8x32xf32>
    %322 = arith.mulf %317, %321 : vector<8x32xf32>
    %323 = arith.addf %319, %322 : vector<8x32xf32>
    %324 = math.tanh %323 : vector<8x32xf32>
    %cst_67 = arith.constant 1.000000e+00 : f32
    %325 = vector.broadcast %cst_67 : f32 to vector<8x32xf32>
    %326 = arith.subf %325, %318 : vector<8x32xf32>
    %327 = arith.mulf %326, %324 : vector<8x32xf32>
    %328 = arith.mulf %318, %303 : vector<8x32xf32>
    %329 = arith.addf %327, %328 : vector<8x32xf32>
    %c3 = arith.constant 3 : index
    %330 = memref.load %arg9[%c3] : memref<8xf32, #tpu.memory_space<smem>>
    %331 = vector.broadcast %330 : f32 to vector<8x32xf32>
    %332 = arith.mulf %331, %329 : vector<8x32xf32>
    %333 = arith.addf %307, %332 : vector<8x32xf32>
    %cst_68 = arith.constant dense<0.000000e+00> : vector<8x96xf32>
    %334 = tpu.matmul %329, %198, %cst_68 {dimension_numbers = #tpu.dot_dimension_numbers<[1], [0], [0], [1], [0, 0, 1, 1], [], []>} : vector<8x32xf32>, vector<32x96xf32>, vector<8x96xf32> -> vector<8x96xf32>
    %335 = vector.extract_strided_slice %218 {offsets = [0, 0], sizes = [8, 64], strides = [1, 1]} : vector<8x96xf32> to vector<8x64xf32>
    %336 = vector.extract_strided_slice %334 {offsets = [0, 0], sizes = [8, 64], strides = [1, 1]} : vector<8x96xf32> to vector<8x64xf32>
    %337 = arith.addf %335, %336 : vector<8x64xf32>
    %338 = arith.negf %337 : vector<8x64xf32>
    %339 = math.exp %338 : vector<8x64xf32>
    %cst_69 = arith.constant 1.000000e+00 : f32
    %340 = vector.broadcast %cst_69 : f32 to vector<8x64xf32>
    %341 = arith.addf %340, %339 : vector<8x64xf32>
    %342 = arith.divf %340, %341 : vector<8x64xf32>
    %343 = vector.extract_strided_slice %342 {offsets = [0, 0], sizes = [8, 32], strides = [1, 1]} : vector<8x64xf32> to vector<8x32xf32>
    %344 = vector.extract_strided_slice %342 {offsets = [0, 32], sizes = [8, 32], strides = [1, 1]} : vector<8x64xf32> to vector<8x32xf32>
    %345 = vector.extract_strided_slice %218 {offsets = [0, 64], sizes = [8, 32], strides = [1, 1]} : vector<8x96xf32> to vector<8x32xf32>
    %346 = vector.extract_strided_slice %334 {offsets = [0, 64], sizes = [8, 32], strides = [1, 1]} : vector<8x96xf32> to vector<8x32xf32>
    %347 = arith.addf %346, %202 : vector<8x32xf32>
    %348 = arith.mulf %343, %347 : vector<8x32xf32>
    %349 = arith.addf %345, %348 : vector<8x32xf32>
    %350 = math.tanh %349 : vector<8x32xf32>
    %cst_70 = arith.constant 1.000000e+00 : f32
    %351 = vector.broadcast %cst_70 : f32 to vector<8x32xf32>
    %352 = arith.subf %351, %344 : vector<8x32xf32>
    %353 = arith.mulf %352, %350 : vector<8x32xf32>
    %354 = arith.mulf %344, %329 : vector<8x32xf32>
    %355 = arith.addf %353, %354 : vector<8x32xf32>
    %c4 = arith.constant 4 : index
    %356 = memref.load %arg9[%c4] : memref<8xf32, #tpu.memory_space<smem>>
    %357 = vector.broadcast %356 : f32 to vector<8x32xf32>
    %358 = arith.mulf %357, %355 : vector<8x32xf32>
    %359 = arith.addf %333, %358 : vector<8x32xf32>
    %cst_71 = arith.constant dense<0.000000e+00> : vector<8x96xf32>
    %360 = tpu.matmul %355, %198, %cst_71 {dimension_numbers = #tpu.dot_dimension_numbers<[1], [0], [0], [1], [0, 0, 1, 1], [], []>} : vector<8x32xf32>, vector<32x96xf32>, vector<8x96xf32> -> vector<8x96xf32>
    %361 = vector.extract_strided_slice %221 {offsets = [0, 0], sizes = [8, 64], strides = [1, 1]} : vector<8x96xf32> to vector<8x64xf32>
    %362 = vector.extract_strided_slice %360 {offsets = [0, 0], sizes = [8, 64], strides = [1, 1]} : vector<8x96xf32> to vector<8x64xf32>
    %363 = arith.addf %361, %362 : vector<8x64xf32>
    %364 = arith.negf %363 : vector<8x64xf32>
    %365 = math.exp %364 : vector<8x64xf32>
    %cst_72 = arith.constant 1.000000e+00 : f32
    %366 = vector.broadcast %cst_72 : f32 to vector<8x64xf32>
    %367 = arith.addf %366, %365 : vector<8x64xf32>
    %368 = arith.divf %366, %367 : vector<8x64xf32>
    %369 = vector.extract_strided_slice %368 {offsets = [0, 0], sizes = [8, 32], strides = [1, 1]} : vector<8x64xf32> to vector<8x32xf32>
    %370 = vector.extract_strided_slice %368 {offsets = [0, 32], sizes = [8, 32], strides = [1, 1]} : vector<8x64xf32> to vector<8x32xf32>
    %371 = vector.extract_strided_slice %221 {offsets = [0, 64], sizes = [8, 32], strides = [1, 1]} : vector<8x96xf32> to vector<8x32xf32>
    %372 = vector.extract_strided_slice %360 {offsets = [0, 64], sizes = [8, 32], strides = [1, 1]} : vector<8x96xf32> to vector<8x32xf32>
    %373 = arith.addf %372, %202 : vector<8x32xf32>
    %374 = arith.mulf %369, %373 : vector<8x32xf32>
    %375 = arith.addf %371, %374 : vector<8x32xf32>
    %376 = math.tanh %375 : vector<8x32xf32>
    %cst_73 = arith.constant 1.000000e+00 : f32
    %377 = vector.broadcast %cst_73 : f32 to vector<8x32xf32>
    %378 = arith.subf %377, %370 : vector<8x32xf32>
    %379 = arith.mulf %378, %376 : vector<8x32xf32>
    %380 = arith.mulf %370, %355 : vector<8x32xf32>
    %381 = arith.addf %379, %380 : vector<8x32xf32>
    %c5 = arith.constant 5 : index
    %382 = memref.load %arg9[%c5] : memref<8xf32, #tpu.memory_space<smem>>
    %383 = vector.broadcast %382 : f32 to vector<8x32xf32>
    %384 = arith.mulf %383, %381 : vector<8x32xf32>
    %385 = arith.addf %359, %384 : vector<8x32xf32>
    %cst_74 = arith.constant dense<0.000000e+00> : vector<8x96xf32>
    %386 = tpu.matmul %381, %198, %cst_74 {dimension_numbers = #tpu.dot_dimension_numbers<[1], [0], [0], [1], [0, 0, 1, 1], [], []>} : vector<8x32xf32>, vector<32x96xf32>, vector<8x96xf32> -> vector<8x96xf32>
    %387 = vector.extract_strided_slice %224 {offsets = [0, 0], sizes = [8, 64], strides = [1, 1]} : vector<8x96xf32> to vector<8x64xf32>
    %388 = vector.extract_strided_slice %386 {offsets = [0, 0], sizes = [8, 64], strides = [1, 1]} : vector<8x96xf32> to vector<8x64xf32>
    %389 = arith.addf %387, %388 : vector<8x64xf32>
    %390 = arith.negf %389 : vector<8x64xf32>
    %391 = math.exp %390 : vector<8x64xf32>
    %cst_75 = arith.constant 1.000000e+00 : f32
    %392 = vector.broadcast %cst_75 : f32 to vector<8x64xf32>
    %393 = arith.addf %392, %391 : vector<8x64xf32>
    %394 = arith.divf %392, %393 : vector<8x64xf32>
    %395 = vector.extract_strided_slice %394 {offsets = [0, 0], sizes = [8, 32], strides = [1, 1]} : vector<8x64xf32> to vector<8x32xf32>
    %396 = vector.extract_strided_slice %394 {offsets = [0, 32], sizes = [8, 32], strides = [1, 1]} : vector<8x64xf32> to vector<8x32xf32>
    %397 = vector.extract_strided_slice %224 {offsets = [0, 64], sizes = [8, 32], strides = [1, 1]} : vector<8x96xf32> to vector<8x32xf32>
    %398 = vector.extract_strided_slice %386 {offsets = [0, 64], sizes = [8, 32], strides = [1, 1]} : vector<8x96xf32> to vector<8x32xf32>
    %399 = arith.addf %398, %202 : vector<8x32xf32>
    %400 = arith.mulf %395, %399 : vector<8x32xf32>
    %401 = arith.addf %397, %400 : vector<8x32xf32>
    %402 = math.tanh %401 : vector<8x32xf32>
    %cst_76 = arith.constant 1.000000e+00 : f32
    %403 = vector.broadcast %cst_76 : f32 to vector<8x32xf32>
    %404 = arith.subf %403, %396 : vector<8x32xf32>
    %405 = arith.mulf %404, %402 : vector<8x32xf32>
    %406 = arith.mulf %396, %381 : vector<8x32xf32>
    %407 = arith.addf %405, %406 : vector<8x32xf32>
    %c6 = arith.constant 6 : index
    %408 = memref.load %arg9[%c6] : memref<8xf32, #tpu.memory_space<smem>>
    %409 = vector.broadcast %408 : f32 to vector<8x32xf32>
    %410 = arith.mulf %409, %407 : vector<8x32xf32>
    %411 = arith.addf %385, %410 : vector<8x32xf32>
    %cst_77 = arith.constant dense<0.000000e+00> : vector<8x96xf32>
    %412 = tpu.matmul %407, %198, %cst_77 {dimension_numbers = #tpu.dot_dimension_numbers<[1], [0], [0], [1], [0, 0, 1, 1], [], []>} : vector<8x32xf32>, vector<32x96xf32>, vector<8x96xf32> -> vector<8x96xf32>
    %413 = vector.extract_strided_slice %227 {offsets = [0, 0], sizes = [8, 64], strides = [1, 1]} : vector<8x96xf32> to vector<8x64xf32>
    %414 = vector.extract_strided_slice %412 {offsets = [0, 0], sizes = [8, 64], strides = [1, 1]} : vector<8x96xf32> to vector<8x64xf32>
    %415 = arith.addf %413, %414 : vector<8x64xf32>
    %416 = arith.negf %415 : vector<8x64xf32>
    %417 = math.exp %416 : vector<8x64xf32>
    %cst_78 = arith.constant 1.000000e+00 : f32
    %418 = vector.broadcast %cst_78 : f32 to vector<8x64xf32>
    %419 = arith.addf %418, %417 : vector<8x64xf32>
    %420 = arith.divf %418, %419 : vector<8x64xf32>
    %421 = vector.extract_strided_slice %420 {offsets = [0, 0], sizes = [8, 32], strides = [1, 1]} : vector<8x64xf32> to vector<8x32xf32>
    %422 = vector.extract_strided_slice %420 {offsets = [0, 32], sizes = [8, 32], strides = [1, 1]} : vector<8x64xf32> to vector<8x32xf32>
    %423 = vector.extract_strided_slice %227 {offsets = [0, 64], sizes = [8, 32], strides = [1, 1]} : vector<8x96xf32> to vector<8x32xf32>
    %424 = vector.extract_strided_slice %412 {offsets = [0, 64], sizes = [8, 32], strides = [1, 1]} : vector<8x96xf32> to vector<8x32xf32>
    %425 = arith.addf %424, %202 : vector<8x32xf32>
    %426 = arith.mulf %421, %425 : vector<8x32xf32>
    %427 = arith.addf %423, %426 : vector<8x32xf32>
    %428 = math.tanh %427 : vector<8x32xf32>
    %cst_79 = arith.constant 1.000000e+00 : f32
    %429 = vector.broadcast %cst_79 : f32 to vector<8x32xf32>
    %430 = arith.subf %429, %422 : vector<8x32xf32>
    %431 = arith.mulf %430, %428 : vector<8x32xf32>
    %432 = arith.mulf %422, %407 : vector<8x32xf32>
    %433 = arith.addf %431, %432 : vector<8x32xf32>
    %c7 = arith.constant 7 : index
    %434 = memref.load %arg9[%c7] : memref<8xf32, #tpu.memory_space<smem>>
    %435 = vector.broadcast %434 : f32 to vector<8x32xf32>
    %436 = arith.mulf %435, %433 : vector<8x32xf32>
    %437 = arith.addf %411, %436 : vector<8x32xf32>
    %c1_80 = arith.constant 1 : index
    %c0_81 = arith.constant 0 : index
    %c0_82 = arith.constant 0 : index
    %438 = vector.load %arg12[%c1_80, %c0_81, %c0_82] : memref<2x8x32xf32, #tpu.memory_space<vmem>>, vector<1x8x32xf32>
    %439 = vector.shape_cast %438 : vector<1x8x32xf32> to vector<8x32xf32>
    %440 = vector.shape_cast %433 : vector<8x32xf32> to vector<1x8x32xf32>
    tpu.vector_store %arg12[%c1_80, %c0_81, %c0_82], %440 {strides = array<i32>} : memref<2x8x32xf32, #tpu.memory_space<vmem>>, vector<1x8x32xf32>,
    %c0_83 = arith.constant 0 : index
    %441 = memref.load %arg10[%c0_83] : memref<1xf32, #tpu.memory_space<smem>>
    %442 = vector.broadcast %441 : f32 to vector<8x32xf32>
    %443 = arith.addf %437, %442 : vector<8x32xf32>
    %c0_84 = arith.constant 0 : index
    %c0_85 = arith.constant 0 : index
    %444 = vector.load %arg11[%c0_84, %c0_85] : memref<8x32xf32, #tpu.memory_space<vmem>>, vector<8x32xf32>
    tpu.vector_store %arg11[%c0_84, %c0_85], %443 {strides = array<i32>} : memref<8x32xf32, #tpu.memory_space<vmem>>, vector<8x32xf32>,
    return
  }
}

</mosaic_0001>

<bundles_post_ra>
// kernel: encoder_rnn_forward.1
= control target key start
LH: loop header
LB: loop body
LE: loop exit
PB: predicated region body
PF: predicated region fallthrough
CT: control target
= control target key end

     0   :  { %19 = vsyncpa [#allocation4], 0  ;;  %s2182_s0 = inlined_call_operand.vmem [shape: f32[64,32], index: 0, kind: input, shape index: {}]   ;;  %s2183_s1 = inlined_call_operand.vmem [shape: f32[32,96], index: 1, kind: input, shape index: {}]   ;;  %s2184_s2 = inlined_call_operand.vmem [shape: f32[32,96], index: 2, kind: input, shape index: {}]   ;;  %s2185_s3 = inlined_call_operand.vmem [shape: f32[1,96], index: 3, kind: input, shape index: {}]   ;;  %s2186_s4 = inlined_call_operand.vmem [shape: f32[1,32], index: 4, kind: input, shape index: {}]   ;;  %s2187_s5 = inlined_call_operand.hbm [shape: f32[32,96], index: 5, kind: input, shape index: {}]   ;;  %s2188_s6 = inlined_call_operand.hbm [shape: f32[32,96], index: 6, kind: input, shape index: {}]   ;;  %s2189_s7 = inlined_call_operand.vmem [shape: f32[1,96], index: 7, kind: input, shape index: {}]   ;;  %s2190_s8 = inlined_call_operand.vmem [shape: f32[1,32], index: 8, kind: input, shape index: {}]   ;;  %s2191_s9 = inlined_call_operand.vmem [shape: f32[8], index: 9, kind: input, shape index: {}]   ;;  %s2192_s10 = inlined_call_operand.<no memory space> [shape: f32[1], index: 10, kind: input, shape index: {}]   ;;  %s2193_s11 = inlined_call_operand.vmem [shape: f32[8,32], index: 11, kind: output, shape index: {0}]   ;;  %s2194_s12 = inlined_call_operand.vmem [shape: f32[2,8,32], index: 12, kind: output, shape index: {1}]  }
   0x1   :  { %20 = vsyncpa [#allocation7], 0  ;;  %s36_s23 = sshll.u32 %s2187_s5, 4  ;;  %s37_s23 = int_to_ptr.hbm [resolvable:$true] %s36_s23 }
   0x2   :  { %21 = vsyncpa [#allocation5], 0  ;;  %s1681_s24 = smov [#allocation3]   ;;  %s49_s28 = sshll.u32 %s2188_s6, 4  ;;  %s50_s28 = int_to_ptr.hbm [resolvable:$true] %s49_s28 }
   0x3   :  { %s38_s25 = sshll.u32 %s1681_s24, 4  ;;  %s1682_s29 = smov 128   ;;  %s39_s25 = int_to_ptr.vmem [resolvable:$true] %s38_s25 }
   0x4   :  { %s1683_s30 = smov 8   ;;  %s1684_s13 = smov [#allocation6]  }
   0x5   :  { %44 = dma.hbm_to_vmem [thread:$0]  %s37_s23, 512, %s39_s25, [#allocation4], %s1682_s29, %s1682_s29, %s1683_s30  }
   0x6   :  { %s51_s14 = sshll.u32 %s1684_s13, 4  ;;  %s67_s17 = sshll.u32 %s2191_s9, 4  ;;  %s52_s14 = int_to_ptr.vmem [resolvable:$true] %s51_s14  ;;  %s68_s17 = int_to_ptr.vmem [resolvable:$true] %s67_s17 }
   0x7   :  { %57 = dma.hbm_to_vmem [thread:$0]  %s50_s28, 512, %s52_s14, [#allocation7], %s1682_s29, %s1682_s29, %s1683_s30  }
   0x8   :  { %s1685_s5 = smov [#allocation8]  }
   0x9   :  { %70 = dma.vmem_to_smem %s68_s17, 16, %s1685_s5, [#allocation5]  }
   0xa   :  { %1675 = dma.done.wait [#allocation4], 512  }
   0xb   :  { %1676 = vsyncadd [#allocation4], 4294966784 }
   0xc   :  { %1677 = dma.done.wait [#allocation7], 512  }
   0xd   :  { %1678 = vsyncadd [#allocation7], 4294966784 }
   0xe   :  { %1679 = dma.done.wait [#allocation5], 16  }
   0xf   :  { %1680 = vsyncadd [#allocation5], 4294967280 }
  0x10   :  { %85 = sfence }
  0x11   :  { %v105_v0 = vld [vmem:[%s2183_s1 + $0x18] sm:$0xff]  ;;  %v104_v2 = vld [vmem:[%s2183_s1 + $0x10] sm:$0xff]  ;;  %v103_v4 = vld [vmem:[%s2183_s1 + $0x8] sm:$0xff]  ;;  %vm109_vm0 = vcmask 261120   ;;  %s1686_s17 = smov 64   ;;  %v1687_v10 = vmov 0.0  }
  0x12   :  { %v1769_v1 = vld [vmem:[%s2184_s2 + $0x18] sm:$0xff]  ;;  %146 = vmatpush.msra.mxu0 %v105_v0  ;;  %v1778_v3 = vld [vmem:[%s2184_s2 + $0x10] sm:$0xff]  ;;  %v1786_v5 = vld [vmem:[%s2184_s2 + $0x8] sm:$0xff]  ;;  %s1487_s14 = sld [smem:[#allocation8 + $0x1]] }
  0x13   :  { %190 = vmatpush.msra.mxu1 %v1769_v1  ;;  %v102_v6 = vld [vmem:[%s2183_s1] sm:$0xff]  ;;  %258 = vmatpush.msra.mxu2 %v1769_v1  ;;  %v95_v41 = vld [vmem:[%s2182_s0 + $0x8] sm:$0xff]  ;;  %s941_s15 = sld [smem:[#allocation8]] }
  0x14   :  { %323 = vmatpush.msra.mxu3 %v1769_v1  ;;  %147 = vmatpush.msra.mxu0 %v104_v2  ;;  %v1515_v7 = vld [vmem:[%s2186_s4] ss:$0 sm:$0xff]  ;;  %s1490_s1 = sld [smem:[#allocation8 + $0x2]] }
  0x15   :  { %191 = vmatpush.msra.mxu1 %v1778_v3  ;;  %v1800_v8 = vld [vmem:[%s2184_s2] sm:$0xff]  ;;  %259 = vmatpush.msra.mxu2 %v1778_v3  ;;  %s1493_s16 = sld [smem:[#allocation8 + $0x3]] }
  0x16   :  { %324 = vmatpush.msra.mxu3 %v1778_v3  ;;  %148 = vmatpush.msra.mxu0 %v103_v4  ;;  %v94_v9 = vld [vmem:[%s2182_s0] sm:$0xff]  ;;  %s1496_s2 = sld [smem:[#allocation8 + $0x4]] }
  0x17   :  { %192 = vmatpush.msra.mxu1 %v1786_v5  ;;  %218 = vrot.lane.b32.xlu0 %v1515_v7, %s1686_s17  ;;  %v1839_v14 = vld [vmem:[%s2185_s3] ss:$0 sm:$0xff]  ;;  %s1688_s3 = smov 96   ;;  %v96_v7 = vld [vmem:[%s2182_s0 + $0x10] sm:$0xff]  ;;  %s1499_s4 = sld [smem:[#allocation8 + $0x5]] }
  0x18   :  { %260 = vmatpush.msra.mxu2 %v1786_v5  ;;  %149 = vmatpush.msra.mxu0 %v102_v6  ;;  %s1502_s5 = sld [smem:[#allocation8 + $0x6]] }
  0x19   :  { %193 = vmatpush.msra.mxu1 %v1800_v8  ;;  %1453 = vmatmul.msk.f32.vlgmr.msra.gmra.mxu0 %vm109_vm0, %v94_v9 }
  0x1a   :  { %194 = vmatmul.f32.vlgmr.msra.gmra.mxu1 %v1687_v10  ;;  %261 = vmatpush.msra.mxu2 %v1800_v8 }
  0x1b   :  { %325 = vmatpush.msra.mxu3 %v1786_v5  ;;  %388 = vmatpush.msrb.mxu1 %v1769_v1 }
  0x1c   :  { %453 = vmatpush.msrb.mxu2 %v1769_v1 }
  0x1d   :  { %326 = vmatpush.msra.mxu3 %v1800_v8  ;;  %389 = vmatpush.msrb.mxu1 %v1778_v3 }
  0x1e   :  { %454 = vmatpush.msrb.mxu2 %v1778_v3 }
  0x1f   :  { %518 = vmatpush.msrb.mxu3 %v1769_v1  ;;  %390 = vmatpush.msrb.mxu1 %v1786_v5 }
  0x20   :  { %455 = vmatpush.msrb.mxu2 %v1786_v5 }
  0x21   :  { %519 = vmatpush.msrb.mxu3 %v1778_v3  ;;  %391 = vmatpush.msrb.mxu1 %v1800_v8 }
  0x22   :  { %456 = vmatpush.msrb.mxu2 %v1800_v8  ;;  %1454 = vmatmul.msk.f32.gmra.mxu0 %vm109_vm0, %v95_v41 }
  0x23   :  { %520 = vmatpush.msrb.mxu3 %v1786_v5  ;;  %583 = vmatpush.msra.mxu1 %v1769_v1 }
  0x25   :  { %521 = vmatpush.msrb.mxu3 %v1800_v8  ;;  %584 = vmatpush.msra.mxu1 %v1778_v3 }
  0x27   :  { %585 = vmatpush.msra.mxu1 %v1786_v5 }
  0x29   :  { %586 = vmatpush.msra.mxu1 %v1800_v8 }
  0x2a   :  { %1455 = vmatmul.msk.f32.gmra.mxu0 %vm109_vm0, %v96_v7  ;;  %v98_v7 = vld [vmem:[%s2182_s0 + $0x20] sm:$0xff] }
  0x89   :  { %v1832_v11 = vpop.permute.xlu0 %218 }
  0x96   :  { %v151_v15 = vpop.f32.mrf.mxu0 }
  0x97   :  { %v195_v12 = vpop.f32.mrf.mxu1  ;;  %v152_v16 = vadd.f32 %v1839_v14, %v151_v15 }
  0x98   :  { %v221_v13 = vadd.f32 %v1832_v11, %v195_v12 }
  0x99   :  { %v198_v17 = vadd.f32 %v195_v12, %v152_v16 }
  0x9a   :  { %223 = vrot.lane.b32.xlu0 %v221_v13, %s1686_s17 }
  0x9b   :  { %v1461_v18 = vmul.f32 -1.442695, %v198_v17 }
  0x9d   :  { %1519 = vpow2.f32 %v1461_v18 }
  0x9f   :  { %v154_v45 = vpop.f32.mrf.mxu0 }
  0xa0   :  { %v155_v46 = vadd.f32 %v1839_v14, %v154_v45 }
  0xa3   :  { %v1520_v19 = vpop.eup %1519 }
  0xa4   :  { %v202_v20 = vadd.f32 1.0, %v1520_v19 }
  0xa6   :  { %1521 = vrcp.f32 %v202_v20  ;;  %v214_v26 = vand.u32 2147483648, %v202_v20  ;;  %vm208_vm2 = vweird.f32 %v202_v20  ;;  %v212_v27 = vand.u32 2147483647, %v202_v20 }
  0xa7   :  { %v157_v13 = vpop.f32.mrf.mxu0 }
  0xa8   :  { %v215_v29 = vor.u32 1.1754944e-38, %v214_v26  ;;  %vm213_vm4 = vcmp.eq.f32.partialorder %v212_v27, 8.507059e+37  ;;  %v158_v15 = vadd.f32 %v1839_v14, %v157_v13 }
  0xac   :  { %v1522_v21 = vpop.eup %1521 }
  0xad   :  { %v204_v22 = vmul.f32 %v1522_v21, %v202_v20  ;;  %vm209_vm1 = vweird.f32 %v1522_v21 }
  0xae   :  { %vm210_vm3 = vmor %vm208_vm2, %vm209_vm1 }
  0xaf   :  { %v205_v23 = vsub.f32 1.0, %v204_v22 }
  0xb1   :  { %v206_v24 = vmul.f32 %v1522_v21, %v205_v23 }
  0xb3   :  { %v207_v25 = vadd.f32 %v1522_v21, %v206_v24 }
  0xb5   :  { %v211_v28 = vsel %vm210_vm3, %v1522_v21, %v207_v25 }
  0xb6   :  { %v216_v31 = vsel %vm213_vm4, %v215_v29, %v211_v28 }
  0xb7   :  { %v233_v36 = vsub.f32 1.0, %v216_v31  ;;  %v239_v39 = vmul.f32 0.0, %v216_v31 }
 0x10c   :  { %v224_v30 = vpop.permute.xlu0 %223 }
 0x10d   :  { %v226_v32 = vmul.f32 %v224_v30, %v216_v31 }
 0x10f   :  { %228 = vrot.lane.b32.xlu1 %v226_v32, %s1686_s17 }
 0x181   :  { %v229_v33 = vpop.permute.xlu1 %228 }
 0x182   :  { %v231_v34 = vadd.f32 %v229_v33, %v152_v16 }
 0x184   :  { %1523 = vtanh.f32 %v231_v34 }
 0x18a   :  { %v1524_v35 = vpop.eup %1523 }
 0x18b   :  { %235 = vrot.lane.b32.xlu1 %v1524_v35, %s1688_s3  ;;  %v97_v35 = vld [vmem:[%s2182_s0 + $0x18] sm:$0xff] }
 0x18c   :  { %1456 = vmatmul.msk.f32.gmra.mxu0 %vm109_vm0, %v97_v35 }
 0x194   :  { %1457 = vmatmul.msk.f32.gmra.mxu0 %vm109_vm0, %v98_v7  ;;  %v100_v7 = vld [vmem:[%s2182_s0 + $0x30] sm:$0xff] }
 0x1fd   :  { %v236_v37 = vpop.permute.xlu1 %235 }
 0x1fe   :  { %v238_v38 = vmul.f32 %v236_v37, %v233_v36 }
 0x200   :  { %v240_v40 = vadd.f32 %v239_v39, %v238_v38 }
 0x202   :  { %242 = vrot.lane.b32.xlu2 %v240_v40, %s1688_s3 }
 0x209   :  { %v160_v45 = vpop.f32.mrf.mxu0 }
 0x25c   :  { %v1849_v42 = vpop.permute.xlu2 %242 }
 0x25d   :  { %1462 = vmatmul.msk.f32.vlgmr.msra.gmra.mxu2 %vm109_vm0, %v1849_v42 }
 0x25e   :  { %648 = vmatpush.msra.mxu2 %v1769_v1 }
 0x260   :  { %649 = vmatpush.msra.mxu2 %v1778_v3 }
 0x262   :  { %650 = vmatpush.msra.mxu2 %v1786_v5 }
 0x264   :  { %651 = vmatpush.msra.mxu2 %v1800_v8 }
 0x2e0   :  { %v263_v43 = vpop.f32.mrf.mxu2 }
 0x2e1   :  { %v286_v44 = vadd.f32 %v263_v43, %v1832_v11  ;;  %v266_v47 = vadd.f32 %v263_v43, %v155_v46 }
 0x2e3   :  { %288 = vrot.lane.b32.xlu2 %v286_v44, %s1686_s17  ;;  %v1463_v48 = vmul.f32 -1.442695, %v266_v47 }
 0x2e5   :  { %1525 = vpow2.f32 %v1463_v48 }
 0x2eb   :  { %v1526_v49 = vpop.eup %1525 }
 0x2ec   :  { %v270_v50 = vadd.f32 1.0, %v1526_v49 }
 0x2ee   :  { %1527 = vrcp.f32 %v270_v50  ;;  %v282_v56 = vand.u32 2147483648, %v270_v50  ;;  %vm276_vm6 = vweird.f32 %v270_v50  ;;  %v280_v57 = vand.u32 2147483647, %v270_v50 }
 0x2f0   :  { %v283_v59 = vor.u32 1.1754944e-38, %v282_v56  ;;  %vm281_vm8 = vcmp.eq.f32.partialorder %v280_v57, 8.507059e+37 }
 0x2f4   :  { %v1528_v51 = vpop.eup %1527 }
 0x2f5   :  { %v272_v52 = vmul.f32 %v1528_v51, %v270_v50  ;;  %vm277_vm5 = vweird.f32 %v1528_v51 }
 0x2f6   :  { %vm278_vm7 = vmor %vm276_vm6, %vm277_vm5 }
 0x2f7   :  { %v273_v53 = vsub.f32 1.0, %v272_v52 }
 0x2f9   :  { %v274_v54 = vmul.f32 %v1528_v51, %v273_v53 }
 0x2fb   :  { %v275_v55 = vadd.f32 %v1528_v51, %v274_v54 }
 0x2fd   :  { %v279_v58 = vsel %vm278_vm7, %v1528_v51, %v275_v55 }
 0x2fe   :  { %v284_v61 = vsel %vm281_vm8, %v283_v59, %v279_v58 }
 0x2ff   :  { %v298_v2 = vsub.f32 1.0, %v284_v61  ;;  %v304_v4 = vmul.f32 %v284_v61, %v240_v40 }
 0x33d   :  { %v289_v60 = vpop.permute.xlu2 %288 }
 0x33e   :  { %v291_v62 = vmul.f32 %v289_v60, %v284_v61 }
 0x340   :  { %293 = vrot.lane.b32.xlu0 %v291_v62, %s1686_s17 }
 0x3b2   :  { %v294_v63 = vpop.permute.xlu0 %293 }
 0x3b3   :  { %v296_v0 = vadd.f32 %v294_v63, %v155_v46  ;;  %v161_v46 = vadd.f32 %v1839_v14, %v160_v45  ;;  %v99_v45 = vld [vmem:[%s2182_s0 + $0x28] sm:$0xff] }
 0x3b4   :  { %1458 = vmatmul.msk.f32.gmra.mxu0 %vm109_vm0, %v99_v45 }
 0x3b5   :  { %1529 = vtanh.f32 %v296_v0 }
 0x3bb   :  { %v1530_v1 = vpop.eup %1529 }
 0x3bc   :  { %300 = vrot.lane.b32.xlu1 %v1530_v1, %s1688_s3  ;;  %1459 = vmatmul.msk.f32.gmra.mxu0 %vm109_vm0, %v100_v7 }
 0x42e   :  { %v301_v3 = vpop.permute.xlu1 %300 }
 0x42f   :  { %v303_v5 = vmul.f32 %v301_v3, %v298_v2 }
 0x431   :  { %v305_v6 = vadd.f32 %v304_v4, %v303_v5 }
 0x433   :  { %307 = vrot.lane.b32.xlu2 %v305_v6, %s1688_s3 }
 0x48d   :  { %v1867_v8 = vpop.permute.xlu2 %307 }
 0x48e   :  { %1464 = vmatmul.msk.f32.vlgmr.msra.gmra.mxu3 %vm109_vm0, %v1867_v8 }
 0x511   :  { %v328_v9 = vpop.f32.mrf.mxu3 }
 0x512   :  { %v351_v12 = vadd.f32 %v328_v9, %v1832_v11  ;;  %v331_v16 = vadd.f32 %v328_v9, %v158_v15 }
 0x514   :  { %353 = vrot.lane.b32.xlu0 %v351_v12, %s1686_s17  ;;  %v1465_v17 = vmul.f32 -1.442695, %v331_v16 }
 0x516   :  { %1531 = vpow2.f32 %v1465_v17 }
 0x51c   :  { %v1532_v18 = vpop.eup %1531 }
 0x51d   :  { %v335_v19 = vadd.f32 1.0, %v1532_v18 }
 0x51f   :  { %1533 = vrcp.f32 %v335_v19  ;;  %v347_v25 = vand.u32 2147483648, %v335_v19  ;;  %vm341_vm10 = vweird.f32 %v335_v19  ;;  %v345_v26 = vand.u32 2147483647, %v335_v19 }
 0x521   :  { %v348_v28 = vor.u32 1.1754944e-38, %v347_v25  ;;  %vm346_vm12 = vcmp.eq.f32.partialorder %v345_v26, 8.507059e+37 }
 0x525   :  { %v1534_v20 = vpop.eup %1533 }
 0x526   :  { %v337_v21 = vmul.f32 %v1534_v20, %v335_v19  ;;  %vm342_vm9 = vweird.f32 %v1534_v20 }
 0x527   :  { %vm343_vm11 = vmor %vm341_vm10, %vm342_vm9 }
 0x528   :  { %v338_v22 = vsub.f32 1.0, %v337_v21 }
 0x52a   :  { %v339_v23 = vmul.f32 %v1534_v20, %v338_v22 }
 0x52c   :  { %v340_v24 = vadd.f32 %v1534_v20, %v339_v23 }
 0x52e   :  { %v344_v27 = vsel %vm343_vm11, %v1534_v20, %v340_v24 }
 0x52f   :  { %v349_v30 = vsel %vm346_vm12, %v348_v28, %v344_v27 }
 0x530   :  { %v363_v36 = vsub.f32 1.0, %v349_v30  ;;  %v369_v38 = vmul.f32 %v349_v30, %v305_v6 }
 0x586   :  { %v354_v29 = vpop.permute.xlu0 %353 }
 0x587   :  { %v356_v31 = vmul.f32 %v354_v29, %v349_v30 }
 0x589   :  { %358 = vrot.lane.b32.xlu1 %v356_v31, %s1686_s17 }
 0x5fb   :  { %v359_v32 = vpop.permute.xlu1 %358 }
 0x5fc   :  { %v361_v33 = vadd.f32 %v359_v32, %v158_v15  ;;  %v163_v15 = vpop.f32.mrf.mxu0 }
 0x5fd   :  { %v164_v16 = vadd.f32 %v1839_v14, %v163_v15 }
 0x5fe   :  { %1535 = vtanh.f32 %v361_v33 }
 0x604   :  { %v1536_v34 = vpop.eup %1535 }
 0x605   :  { %365 = vrot.lane.b32.xlu2 %v1536_v34, %s1688_s3 }
 0x65f   :  { %v366_v37 = vpop.permute.xlu2 %365 }
 0x660   :  { %v368_v39 = vmul.f32 %v366_v37, %v363_v36 }
 0x662   :  { %v370_v40 = vadd.f32 %v369_v38, %v368_v39 }
 0x664   :  { %372 = vrot.lane.b32.xlu0 %v370_v40, %s1688_s3 }
 0x6d6   :  { %v1881_v41 = vpop.permute.xlu0 %372 }
 0x6d7   :  { %1466 = vmatmul.msk.f32.vlgmr.msrb.gmra.mxu1 %vm109_vm0, %v1881_v41 }
 0x754   :  { %v393_v43 = vpop.f32.mrf.mxu1 }
 0x755   :  { %v416_v44 = vadd.f32 %v393_v43, %v1832_v11  ;;  %v396_v47 = vadd.f32 %v393_v43, %v161_v46  ;;  %v1908_v43 = vld [vmem:[#allocation3 + $0x18] sm:$0xff] }
 0x756   :  { %728 = vmatpush.msra.mxu3 %v1908_v43  ;;  %748 = vmatpush.msrb.mxu1 %v1908_v43 }
 0x757   :  { %418 = vrot.lane.b32.xlu1 %v416_v44, %s1686_s17  ;;  %v1467_v48 = vmul.f32 -1.442695, %v396_v47  ;;  %v1910_v44 = vld [vmem:[#allocation3 + $0x10] sm:$0xff]  ;;  %v1922_v47 = vld [vmem:[#allocation3] sm:$0xff] }
 0x758   :  { %729 = vmatpush.msra.mxu3 %v1910_v44  ;;  %749 = vmatpush.msrb.mxu1 %v1910_v44 }
 0x759   :  { %1537 = vpow2.f32 %v1467_v48 }
 0x75f   :  { %v1538_v49 = vpop.eup %1537 }
 0x760   :  { %v400_v50 = vadd.f32 1.0, %v1538_v49 }
 0x762   :  { %1539 = vrcp.f32 %v400_v50  ;;  %v412_v56 = vand.u32 2147483648, %v400_v50  ;;  %vm406_vm14 = vweird.f32 %v400_v50  ;;  %v410_v57 = vand.u32 2147483647, %v400_v50 }
 0x764   :  { %v413_v59 = vor.u32 1.1754944e-38, %v412_v56  ;;  %vm411_vm1 = vcmp.eq.f32.partialorder %v410_v57, 8.507059e+37 }
 0x768   :  { %v1540_v51 = vpop.eup %1539 }
 0x769   :  { %v402_v52 = vmul.f32 %v1540_v51, %v400_v50  ;;  %vm407_vm13 = vweird.f32 %v1540_v51 }
 0x76a   :  { %vm408_vm15 = vmor %vm406_vm14, %vm407_vm13 }
 0x76b   :  { %v403_v53 = vsub.f32 1.0, %v402_v52 }
 0x76d   :  { %v404_v54 = vmul.f32 %v1540_v51, %v403_v53 }
 0x76f   :  { %v405_v55 = vadd.f32 %v1540_v51, %v404_v54 }
 0x771   :  { %v409_v58 = vsel %vm408_vm15, %v1540_v51, %v405_v55  ;;  %v166_v51 = vpop.f32.mrf.mxu0 }
 0x772   :  { %v414_v61 = vsel %vm411_vm1, %v413_v59, %v409_v58  ;;  %v167_v52 = vadd.f32 %v1839_v14, %v166_v51  ;;  %v101_v51 = vld [vmem:[%s2182_s0 + $0x38] sm:$0xff] }
 0x773   :  { %v428_v2 = vsub.f32 1.0, %v414_v61  ;;  %v434_v4 = vmul.f32 %v414_v61, %v370_v40  ;;  %1460 = vmatmul.msk.f32.gmra.mxu0 %vm109_vm0, %v101_v51 }
 0x7c9   :  { %v419_v60 = vpop.permute.xlu1 %418 }
 0x7ca   :  { %v421_v62 = vmul.f32 %v419_v60, %v414_v61 }
 0x7cc   :  { %423 = vrot.lane.b32.xlu2 %v421_v62, %s1686_s17 }
 0x826   :  { %v424_v63 = vpop.permute.xlu2 %423 }
 0x827   :  { %v426_v0 = vadd.f32 %v424_v63, %v161_v46  ;;  %v1917_v46 = vld [vmem:[#allocation3 + $0x8] sm:$0xff] }
 0x828   :  { %730 = vmatpush.msra.mxu3 %v1917_v46  ;;  %750 = vmatpush.msrb.mxu1 %v1917_v46 }
 0x829   :  { %1541 = vtanh.f32 %v426_v0 }
 0x82a   :  { %731 = vmatpush.msra.mxu3 %v1922_v47  ;;  %751 = vmatpush.msrb.mxu1 %v1922_v47 }
 0x82f   :  { %v1542_v1 = vpop.eup %1541 }
 0x830   :  { %430 = vrot.lane.b32.xlu0 %v1542_v1, %s1688_s3 }
 0x8a2   :  { %v431_v3 = vpop.permute.xlu0 %430 }
 0x8a3   :  { %v433_v5 = vmul.f32 %v431_v3, %v428_v2 }
 0x8a5   :  { %v435_v6 = vadd.f32 %v434_v4, %v433_v5 }
 0x8a7   :  { %437 = vrot.lane.b32.xlu1 %v435_v6, %s1688_s3 }
 0x919   :  { %v1895_v9 = vpop.permute.xlu1 %437 }
 0x91a   :  { %1468 = vmatmul.msk.f32.vlgmr.msrb.gmra.mxu2 %vm109_vm0, %v1895_v9 }
 0x91b   :  { %768 = vmatpush.msrb.mxu2 %v1908_v43 }
 0x91d   :  { %769 = vmatpush.msrb.mxu2 %v1910_v44 }
 0x91f   :  { %770 = vmatpush.msrb.mxu2 %v1917_v46 }
 0x921   :  { %771 = vmatpush.msrb.mxu2 %v1922_v47 }
 0x99d   :  { %v458_v12 = vpop.f32.mrf.mxu2 }
 0x99e   :  { %v481_v13 = vadd.f32 %v458_v12, %v1832_v11  ;;  %v461_v17 = vadd.f32 %v458_v12, %v164_v16 }
 0x9a0   :  { %483 = vrot.lane.b32.xlu2 %v481_v13, %s1686_s17  ;;  %v1469_v18 = vmul.f32 -1.442695, %v461_v17 }
 0x9a2   :  { %1543 = vpow2.f32 %v1469_v18 }
 0x9a8   :  { %v1544_v19 = vpop.eup %1543 }
 0x9a9   :  { %v465_v20 = vadd.f32 1.0, %v1544_v19 }
 0x9ab   :  { %1545 = vrcp.f32 %v465_v20  ;;  %v477_v26 = vand.u32 2147483648, %v465_v20  ;;  %vm471_vm3 = vweird.f32 %v465_v20  ;;  %v475_v27 = vand.u32 2147483647, %v465_v20 }
 0x9ad   :  { %v478_v29 = vor.u32 1.1754944e-38, %v477_v26  ;;  %vm476_vm5 = vcmp.eq.f32.partialorder %v475_v27, 8.507059e+37 }
 0x9b1   :  { %v1546_v21 = vpop.eup %1545 }
 0x9b2   :  { %v467_v22 = vmul.f32 %v1546_v21, %v465_v20  ;;  %vm472_vm2 = vweird.f32 %v1546_v21  ;;  %v169_v20 = vpop.f32.mrf.mxu0 }
 0x9b3   :  { %vm473_vm4 = vmor %vm471_vm3, %vm472_vm2 }
 0x9b4   :  { %v468_v23 = vsub.f32 1.0, %v467_v22 }
 0x9b6   :  { %v469_v24 = vmul.f32 %v1546_v21, %v468_v23 }
 0x9b8   :  { %v470_v25 = vadd.f32 %v1546_v21, %v469_v24 }
 0x9ba   :  { %v474_v28 = vsel %vm473_vm4, %v1546_v21, %v470_v25  ;;  %v170_v21 = vadd.f32 %v1839_v14, %v169_v20  ;;  %v172_v20 = vpop.f32.mrf.mxu0 }
 0x9bb   :  { %v479_v31 = vsel %vm476_vm5, %v478_v29, %v474_v28 }
 0x9bc   :  { %v493_v36 = vsub.f32 1.0, %v479_v31  ;;  %v499_v38 = vmul.f32 %v479_v31, %v435_v6 }
 0x9fa   :  { %v484_v30 = vpop.permute.xlu2 %483 }
 0x9fb   :  { %v486_v32 = vmul.f32 %v484_v30, %v479_v31 }
 0x9fd   :  { %488 = vrot.lane.b32.xlu0 %v486_v32, %s1686_s17 }
 0xa6f   :  { %v489_v33 = vpop.permute.xlu0 %488 }
 0xa70   :  { %v491_v34 = vadd.f32 %v489_v33, %v164_v16 }
 0xa72   :  { %1547 = vtanh.f32 %v491_v34 }
 0xa78   :  { %v1548_v35 = vpop.eup %1547 }
 0xa79   :  { %495 = vrot.lane.b32.xlu1 %v1548_v35, %s1688_s3 }
 0xaeb   :  { %v496_v37 = vpop.permute.xlu1 %495 }
 0xaec   :  { %v498_v39 = vmul.f32 %v496_v37, %v493_v36 }
 0xaee   :  { %v1904_v40 = vadd.f32 %v499_v38, %v498_v39 }
 0xaf0   :  { %502 = vrot.lane.b32.xlu2 %v1904_v40, %s1688_s3 }
 0xb4a   :  { %v1932_v48 = vpop.permute.xlu2 %502 }
 0xb4b   :  { %1470 = vmatmul.msk.f32.vlgmr.msrb.gmra.mxu3 %vm109_vm0, %v1932_v48 }
 0xb4c   :  { %788 = vmatpush.msrb.mxu3 %v1908_v43 }
 0xb4e   :  { %789 = vmatpush.msrb.mxu3 %v1910_v44 }
 0xb50   :  { %790 = vmatpush.msrb.mxu3 %v1917_v46 }
 0xb52   :  { %791 = vmatpush.msrb.mxu3 %v1922_v47 }
 0xb53   :  { %1476 = vmatmul.msk.f32.vlgmr.msra.gmra.mxu3 %vm109_vm0, %v1849_v42 }
 0xb54   :  { %848 = vmatpush.msra.mxu3 %v1908_v43 }
 0xb56   :  { %849 = vmatpush.msra.mxu3 %v1910_v44 }
 0xb58   :  { %850 = vmatpush.msra.mxu3 %v1917_v46 }
 0xb5a   :  { %851 = vmatpush.msra.mxu3 %v1922_v47 }
 0xb5b   :  { %1479 = vmatmul.msk.f32.vlgmr.msrb.gmra.mxu3 %vm109_vm0, %v1895_v9 }
 0xbce   :  { %v523_v49 = vpop.f32.mrf.mxu3 }
 0xbcf   :  { %v546_v50 = vadd.f32 %v523_v49, %v1832_v11  ;;  %v526_v42 = vadd.f32 %v523_v49, %v167_v52 }
 0xbd1   :  { %548 = vrot.lane.b32.xlu0 %v546_v50, %s1686_s17  ;;  %v1471_v53 = vmul.f32 -1.442695, %v526_v42  ;;  %v1992_v42 = vld [vmem:[#allocation6 + $0x10] sm:$0xff] }
 0xbd3   :  { %1549 = vpow2.f32 %v1471_v53  ;;  %v1996_v53 = vld [vmem:[#allocation6 + $0x8] sm:$0xff] }
 0xbd9   :  { %v1550_v54 = vpop.eup %1549 }
 0xbda   :  { %v530_v55 = vadd.f32 1.0, %v1550_v54  ;;  %v2000_v54 = vld [vmem:[#allocation6] sm:$0xff] }
 0xbdc   :  { %1551 = vrcp.f32 %v530_v55  ;;  %v542_v61 = vand.u32 2147483648, %v530_v55  ;;  %vm536_vm7 = vweird.f32 %v530_v55  ;;  %v540_v62 = vand.u32 2147483647, %v530_v55 }
 0xbde   :  { %v543_v0 = vor.u32 1.1754944e-38, %v542_v61  ;;  %vm541_vm9 = vcmp.eq.f32.partialorder %v540_v62, 8.507059e+37 }
 0xbe2   :  { %v1552_v56 = vpop.eup %1551 }
 0xbe3   :  { %v532_v57 = vmul.f32 %v1552_v56, %v530_v55  ;;  %vm537_vm6 = vweird.f32 %v1552_v56  ;;  %v1518_v55 = vld [vmem:[%s2190_s8] ss:$0 sm:$0xff] }
 0xbe4   :  { %vm538_vm8 = vmor %vm536_vm7, %vm537_vm6 }
 0xbe5   :  { %v533_v58 = vsub.f32 1.0, %v532_v57 }
 0xbe7   :  { %v534_v59 = vmul.f32 %v1552_v56, %v533_v58  ;;  %v733_v58 = vpop.f32.mrf.mxu3 }
 0xbe9   :  { %v535_v60 = vadd.f32 %v1552_v56, %v534_v59 }
 0xbeb   :  { %v539_v63 = vsel %vm538_vm8, %v1552_v56, %v535_v60 }
 0xbec   :  { %v544_v2 = vsel %vm541_vm9, %v543_v0, %v539_v63 }
 0xbed   :  { %v558_v9 = vsub.f32 1.0, %v544_v2  ;;  %v564_v13 = vmul.f32 %v544_v2, %v1904_v40 }
 0xc43   :  { %v549_v1 = vpop.permute.xlu0 %548 }
 0xc44   :  { %v551_v3 = vmul.f32 %v549_v1, %v544_v2 }
 0xc46   :  { %553 = vrot.lane.b32.xlu1 %v551_v3, %s1686_s17 }
 0xcb8   :  { %v554_v4 = vpop.permute.xlu1 %553 }
 0xcb9   :  { %v556_v5 = vadd.f32 %v554_v4, %v167_v52  ;;  %v1988_v52 = vld [vmem:[#allocation6 + $0x18] sm:$0xff] }
 0xcba   :  { %962 = vmatpush.msrb.mxu3 %v1988_v52 }
 0xcbb   :  { %1553 = vtanh.f32 %v556_v5 }
 0xcbc   :  { %963 = vmatpush.msrb.mxu3 %v1992_v42 }
 0xcbe   :  { %964 = vmatpush.msrb.mxu3 %v1996_v53 }
 0xcc0   :  { %965 = vmatpush.msrb.mxu3 %v2000_v54 }
 0xcc1   :  { %v1554_v6 = vpop.eup %1553 }
 0xcc2   :  { %560 = vrot.lane.b32.xlu2 %v1554_v6, %s1688_s3 }
 0xd1c   :  { %v561_v12 = vpop.permute.xlu2 %560 }
 0xd1d   :  { %v563_v15 = vmul.f32 %v561_v12, %v558_v9 }
 0xd1f   :  { %v565_v16 = vadd.f32 %v564_v13, %v563_v15 }
 0xd21   :  { %567 = vrot.lane.b32.xlu0 %v565_v16, %s1688_s3 }
 0xd93   :  { %v1959_v17 = vpop.permute.xlu0 %567 }
 0xd94   :  { %1472 = vmatmul.msk.f32.vlgmr.msra.gmra.mxu1 %vm109_vm0, %v1959_v17 }
 0xd95   :  { %808 = vmatpush.msra.mxu1 %v1908_v43 }
 0xd97   :  { %809 = vmatpush.msra.mxu1 %v1910_v44 }
 0xd99   :  { %810 = vmatpush.msra.mxu1 %v1917_v46 }
 0xd9b   :  { %811 = vmatpush.msra.mxu1 %v1922_v47 }
 0xd9c   :  { %1477 = vmatmul.msk.f32.vlgmr.msrb.gmra.mxu1 %vm109_vm0, %v1867_v8 }
 0xd9d   :  { %870 = vmatpush.msrb.mxu1 %v1908_v43 }
 0xd9f   :  { %871 = vmatpush.msrb.mxu1 %v1910_v44 }
 0xda1   :  { %872 = vmatpush.msrb.mxu1 %v1917_v46 }
 0xda3   :  { %873 = vmatpush.msrb.mxu1 %v1922_v47 }
 0xda4   :  { %1480 = vmatmul.msk.f32.vlgmr.msra.gmra.mxu1 %vm109_vm0, %v1932_v48 }
 0xda5   :  { %1031 = vmatpush.msra.mxu1 %v1988_v52 }
 0xda7   :  { %1032 = vmatpush.msra.mxu1 %v1992_v42 }
 0xda9   :  { %1033 = vmatpush.msra.mxu1 %v1996_v53 }
 0xdab   :  { %1034 = vmatpush.msra.mxu1 %v2000_v54 }
 0xe11   :  { %v588_v18 = vpop.f32.mrf.mxu1 }
 0xe12   :  { %v611_v19 = vadd.f32 %v588_v18, %v1832_v11  ;;  %v591_v8 = vadd.f32 %v588_v18, %v170_v21 }
 0xe14   :  { %613 = vrot.lane.b32.xlu1 %v611_v19, %s1686_s17  ;;  %v1473_v22 = vmul.f32 -1.442695, %v591_v8 }
 0xe16   :  { %1555 = vpow2.f32 %v1473_v22 }
 0xe1c   :  { %v1556_v23 = vpop.eup %1555 }
 0xe1d   :  { %v595_v24 = vadd.f32 1.0, %v1556_v23 }
 0xe1f   :  { %1557 = vrcp.f32 %v595_v24  ;;  %v607_v30 = vand.u32 2147483648, %v595_v24  ;;  %vm601_vm11 = vweird.f32 %v595_v24  ;;  %v605_v31 = vand.u32 2147483647, %v595_v24 }
 0xe21   :  { %v608_v33 = vor.u32 1.1754944e-38, %v607_v30  ;;  %vm606_vm13 = vcmp.eq.f32.partialorder %v605_v31, 8.507059e+37 }
 0xe25   :  { %v1558_v25 = vpop.eup %1557 }
 0xe26   :  { %v597_v26 = vmul.f32 %v1558_v25, %v595_v24  ;;  %vm602_vm10 = vweird.f32 %v1558_v25 }
 0xe27   :  { %vm603_vm12 = vmor %vm601_vm11, %vm602_vm10 }
 0xe28   :  { %v598_v27 = vsub.f32 1.0, %v597_v26 }
 0xe2a   :  { %v599_v28 = vmul.f32 %v1558_v25, %v598_v27 }
 0xe2c   :  { %v600_v29 = vadd.f32 %v1558_v25, %v599_v28 }
 0xe2e   :  { %v604_v32 = vsel %vm603_vm12, %v1558_v25, %v600_v29 }
 0xe2f   :  { %v609_v35 = vsel %vm606_vm13, %v608_v33, %v604_v32 }
 0xe30   :  { %v623_v40 = vsub.f32 1.0, %v609_v35  ;;  %v629_v48 = vmul.f32 %v609_v35, %v565_v16 }
 0xe86   :  { %v614_v34 = vpop.permute.xlu1 %613 }
 0xe87   :  { %v616_v36 = vmul.f32 %v614_v34, %v609_v35 }
 0xe89   :  { %618 = vrot.lane.b32.xlu2 %v616_v36, %s1686_s17 }
 0xe91   :  { %918 = vrot.lane.b32.xlu2 %v1518_v55, %s1686_s17 }
 0xee3   :  { %v619_v37 = vpop.permute.xlu2 %618 }
 0xee4   :  { %v621_v38 = vadd.f32 %v619_v37, %v170_v21  ;;  %v173_v21 = vadd.f32 %v1839_v14, %v172_v20 }
 0xee6   :  { %1559 = vtanh.f32 %v621_v38 }
 0xeec   :  { %v1560_v39 = vpop.eup %1559 }
 0xeed   :  { %625 = vrot.lane.b32.xlu0 %v1560_v39, %s1688_s3 }
 0xf5f   :  { %v626_v45 = vpop.permute.xlu0 %625 }
 0xf60   :  { %v628_v49 = vmul.f32 %v626_v45, %v623_v40  ;;  %v2064_v45 = vpop.f32.mrf.mxu3 }
 0xf62   :  { %v1980_v50 = vadd.f32 %v629_v48, %v628_v49 }
 0xf64   :  { %632 = vrot.lane.b32.xlu1 %v1980_v50, %s1688_s3 }
 0xfd6   :  { %v633_v56 = vpop.permute.xlu1 %632 }
 0xfd7   :  { %1474 = vmatmul.msk.f32.vlgmr.msra.gmra.mxu2 %vm109_vm0, %v633_v56  ;;  %1482 = vmatmul.msk.f32.vlgmr.msra.gmra.mxu3 %vm109_vm0, %v633_v56 }
 0xfd8   :  { %828 = vmatpush.msra.mxu2 %v1908_v43  ;;  %1169 = vmatpush.msra.mxu3 %v1988_v52 }
 0xfda   :  { %829 = vmatpush.msra.mxu2 %v1910_v44  ;;  %1170 = vmatpush.msra.mxu3 %v1992_v42 }
 0xfdc   :  { %830 = vmatpush.msra.mxu2 %v1917_v46  ;;  %1171 = vmatpush.msra.mxu3 %v1996_v53  ;;  %v2039_v46 = vpop.permute.xlu2 %918 }
 0xfde   :  { %831 = vmatpush.msra.mxu2 %v1922_v47  ;;  %1172 = vmatpush.msra.mxu3 %v2000_v54 }
 0xfdf   :  { %1478 = vmatmul.msk.f32.vlgmr.msrb.gmra.mxu2 %vm109_vm0, %v1881_v41 }
 0xfe0   :  { %890 = vmatpush.msrb.mxu2 %v1988_v52 }
 0xfe2   :  { %891 = vmatpush.msrb.mxu2 %v1992_v42 }
 0xfe4   :  { %892 = vmatpush.msrb.mxu2 %v1996_v53 }
 0xfe6   :  { %893 = vmatpush.msrb.mxu2 %v2000_v54 }
 0xfe7   :  { %1481 = vmatmul.msk.f32.vlgmr.msra.gmra.mxu2 %vm109_vm0, %v1959_v17 }
 0xfe8   :  { %1100 = vmatpush.msra.mxu2 %v1988_v52 }
 0xfea   :  { %1101 = vmatpush.msra.mxu2 %v1992_v42 }
 0xfec   :  { %1102 = vmatpush.msra.mxu2 %v1996_v53 }
 0xfee   :  { %1103 = vmatpush.msra.mxu2 %v2000_v54 }
 0xfef   :  { %894 = vmatmul.f32.vlgmr.msrb.gmra.mxu2 %v1687_v10  ;;  %v2046_v10 = vld [vmem:[%s2189_s7] ss:$0 sm:$0xff] }
 0xff0   :  { %1307 = vmatpush.msrb.mxu2 %v1988_v52  ;;  %v734_v59 = vadd.f32 %v2046_v10, %v733_v58 }
 0xff2   :  { %1308 = vmatpush.msrb.mxu2 %v1992_v42 }
 0xff4   :  { %1309 = vmatpush.msrb.mxu2 %v1996_v53 }
 0xff6   :  { %1310 = vmatpush.msrb.mxu2 %v2000_v54 }
0x105a   :  { %v653_v41 = vpop.f32.mrf.mxu2  ;;  %v2066_v48 = vpop.f32.mrf.mxu3 }
0x105b   :  { %v676_v16 = vadd.f32 %v653_v41, %v1832_v11  ;;  %v656_v8 = vadd.f32 %v653_v41, %v173_v21 }
0x105d   :  { %v1475_v22 = vmul.f32 -1.442695, %v656_v8 }
0x1062   :  { %v2035_v43 = vpop.f32.mrf.mxu2 }
0x106a   :  { %v2037_v44 = vpop.f32.mrf.mxu2 }
0x1072   :  { %v895_v47 = vpop.f32.mrf.mxu2 }
0x1073   :  { %v921_v57 = vadd.f32 %v2039_v46, %v895_v47  ;;  %v898_v60 = vadd.f32 %v895_v47, %v734_v59  ;;  %v753_v47 = vpop.f32.mrf.mxu1 }
0x1075   :  { %923 = vrot.lane.b32.xlu0 %v921_v57, %s1686_s17  ;;  %v1484_v61 = vmul.f32 -1.442695, %v898_v60  ;;  %v754_v57 = vadd.f32 %v2046_v10, %v753_v47 }
0x1077   :  { %1561 = vpow2.f32 %v1484_v61 }
0x107d   :  { %v1562_v62 = vpop.eup %1561 }
0x107e   :  { %v902_v63 = vadd.f32 1.0, %v1562_v62 }
0x1080   :  { %1563 = vrcp.f32 %v902_v63  ;;  %v914_v5 = vand.u32 2147483648, %v902_v63  ;;  %vm908_vm15 = vweird.f32 %v902_v63  ;;  %v912_v6 = vand.u32 2147483647, %v902_v63 }
0x1082   :  { %v915_v9 = vor.u32 1.1754944e-38, %v914_v5  ;;  %vm913_vm2 = vcmp.eq.f32.partialorder %v912_v6, 8.507059e+37 }
0x1086   :  { %v1564_v0 = vpop.eup %1563 }
0x1087   :  { %v904_v1 = vmul.f32 %v1564_v0, %v902_v63  ;;  %vm909_vm14 = vweird.f32 %v1564_v0 }
0x1088   :  { %vm910_vm1 = vmor %vm908_vm15, %vm909_vm14 }
0x1089   :  { %v905_v2 = vsub.f32 1.0, %v904_v1 }
0x108b   :  { %v906_v3 = vmul.f32 %v1564_v0, %v905_v2 }
0x108d   :  { %v907_v4 = vadd.f32 %v1564_v0, %v906_v3 }
0x108f   :  { %v911_v7 = vsel %vm910_vm1, %v1564_v0, %v907_v4 }
0x1090   :  { %v916_v12 = vsel %vm913_vm2, %v915_v9, %v911_v7 }
0x1091   :  { %v933_v28 = vsub.f32 1.0, %v916_v12  ;;  %v939_v30 = vmul.f32 0.0, %v916_v12 }
0x10e7   :  { %v924_v13 = vpop.permute.xlu0 %923 }
0x10e8   :  { %v926_v15 = vmul.f32 %v924_v13, %v916_v12 }
0x10ea   :  { %928 = vrot.lane.b32.xlu1 %v926_v15, %s1686_s17 }
0x10f2   :  { %678 = vrot.lane.b32.xlu1 %v676_v16, %s1686_s17 }
0x115c   :  { %v929_v17 = vpop.permute.xlu1 %928 }
0x115d   :  { %v931_v18 = vadd.f32 %v929_v17, %v734_v59 }
0x115f   :  { %1565 = vtanh.f32 %v931_v18 }
0x1160   :  { %1567 = vpow2.f32 %v1475_v22 }
0x1164   :  { %v679_v37 = vpop.permute.xlu1 %678 }
0x1165   :  { %v1566_v19 = vpop.eup %1565 }
0x1166   :  { %935 = vrot.lane.b32.xlu2 %v1566_v19, %s1688_s3  ;;  %v1568_v23 = vpop.eup %1567 }
0x1167   :  { %v660_v24 = vadd.f32 1.0, %v1568_v23 }
0x1169   :  { %1569 = vrcp.f32 %v660_v24  ;;  %v672_v34 = vand.u32 2147483648, %v660_v24  ;;  %vm666_vm4 = vweird.f32 %v660_v24  ;;  %v670_v14 = vand.u32 2147483647, %v660_v24 }
0x116b   :  { %v673_v36 = vor.u32 1.1754944e-38, %v672_v34  ;;  %vm671_vm6 = vcmp.eq.f32.partialorder %v670_v14, 8.507059e+37 }
0x116f   :  { %v1570_v25 = vpop.eup %1569 }
0x1170   :  { %v662_v26 = vmul.f32 %v1570_v25, %v660_v24  ;;  %vm667_vm3 = vweird.f32 %v1570_v25 }
0x1171   :  { %vm668_vm5 = vmor %vm666_vm4, %vm667_vm3 }
0x1172   :  { %v663_v11 = vsub.f32 1.0, %v662_v26 }
0x1174   :  { %v664_v27 = vmul.f32 %v1570_v25, %v663_v11  ;;  %v774_v11 = vadd.f32 %v2046_v10, %v2035_v43 }
0x1176   :  { %v665_v32 = vadd.f32 %v1570_v25, %v664_v27 }
0x1178   :  { %v669_v35 = vsel %vm668_vm5, %v1570_v25, %v665_v32 }
0x1179   :  { %v674_v38 = vsel %vm671_vm6, %v673_v36, %v669_v35 }
0x117a   :  { %v681_v39 = vmul.f32 %v679_v37, %v674_v38  ;;  %v688_v13 = vsub.f32 1.0, %v674_v38  ;;  %v694_v16 = vmul.f32 %v674_v38, %v1980_v50 }
0x11c0   :  { %v936_v29 = vpop.permute.xlu2 %935 }
0x11c1   :  { %v938_v31 = vmul.f32 %v936_v29, %v933_v28 }
0x11c3   :  { %v2054_v33 = vadd.f32 %v939_v30, %v938_v31 }
0x11c5   :  { %946 = vrot.lane.b32.xlu0 %v2054_v33, %s1688_s3 }
0x11cd   :  { %683 = vrot.lane.b32.xlu0 %v681_v39, %s1686_s17 }
0x1237   :  { %v947_v40 = vpop.permute.xlu0 %946 }
0x1238   :  { %1485 = vmatmul.msk.f32.vlgmr.msrb.gmra.mxu3 %vm109_vm0, %v947_v40 }
0x1239   :  { %1376 = vmatpush.msrb.mxu3 %v1988_v52 }
0x123b   :  { %1377 = vmatpush.msrb.mxu3 %v1992_v42 }
0x123d   :  { %1378 = vmatpush.msrb.mxu3 %v1996_v53 }
0x123f   :  { %1379 = vmatpush.msrb.mxu3 %v2000_v54  ;;  %v684_v49 = vpop.permute.xlu0 %683 }
0x1240   :  { %v686_v51 = vadd.f32 %v684_v49, %v173_v21 }
0x1242   :  { %1571 = vtanh.f32 %v686_v51 }
0x1248   :  { %v1572_v41 = vpop.eup %1571 }
0x12bb   :  { %v967_v55 = vpop.f32.mrf.mxu3 }
0x12bc   :  { %v990_v56 = vadd.f32 %v967_v55, %v2039_v46  ;;  %v970_v58 = vadd.f32 %v967_v55, %v754_v57 }
0x12be   :  { %992 = vrot.lane.b32.xlu2 %v990_v56, %s1686_s17  ;;  %v1486_v59 = vmul.f32 -1.442695, %v970_v58 }
0x12c0   :  { %1573 = vpow2.f32 %v1486_v59 }
0x12c6   :  { %690 = vrot.lane.b32.xlu2 %v1572_v41, %s1688_s3  ;;  %v1574_v60 = vpop.eup %1573 }
0x12c7   :  { %v974_v61 = vadd.f32 1.0, %v1574_v60 }
0x12c9   :  { %1575 = vrcp.f32 %v974_v61  ;;  %v986_v3 = vand.u32 2147483648, %v974_v61  ;;  %vm980_vm8 = vweird.f32 %v974_v61  ;;  %v984_v4 = vand.u32 2147483647, %v974_v61 }
0x12cb   :  { %v987_v6 = vor.u32 1.1754944e-38, %v986_v3  ;;  %vm985_vm10 = vcmp.eq.f32.partialorder %v984_v4, 8.507059e+37 }
0x12cf   :  { %v1576_v62 = vpop.eup %1575 }
0x12d0   :  { %v976_v63 = vmul.f32 %v1576_v62, %v974_v61  ;;  %vm981_vm7 = vweird.f32 %v1576_v62 }
0x12d1   :  { %vm982_vm9 = vmor %vm980_vm8, %vm981_vm7 }
0x12d2   :  { %v977_v0 = vsub.f32 1.0, %v976_v63  ;;  %v794_v63 = vadd.f32 %v2046_v10, %v2064_v45 }
0x12d4   :  { %v978_v1 = vmul.f32 %v1576_v62, %v977_v0 }
0x12d6   :  { %v979_v2 = vadd.f32 %v1576_v62, %v978_v1 }
0x12d8   :  { %v983_v5 = vsel %vm982_vm9, %v1576_v62, %v979_v2 }
0x12d9   :  { %v988_v9 = vsel %vm985_vm10, %v987_v6, %v983_v5 }
0x12da   :  { %v1002_v50 = vsub.f32 1.0, %v988_v9  ;;  %v1008_v23 = vmul.f32 %v988_v9, %v2054_v33 }
0x1318   :  { %v993_v7 = vpop.permute.xlu2 %992 }
0x1319   :  { %v995_v12 = vmul.f32 %v993_v7, %v988_v9 }
0x131b   :  { %997 = vrot.lane.b32.xlu1 %v995_v12, %s1686_s17 }
0x1320   :  { %v691_v15 = vpop.permute.xlu2 %690 }
0x1321   :  { %v693_v17 = vmul.f32 %v691_v15, %v688_v13 }
0x1323   :  { %v695_v18 = vadd.f32 %v694_v16, %v693_v17 }
0x1325   :  { %697 = vrot.lane.b32.xlu1 %v695_v18, %s1688_s3 }
0x138d   :  { %v998_v19 = vpop.permute.xlu1 %997 }
0x138e   :  { %v1000_v20 = vadd.f32 %v998_v19, %v754_v57 }
0x1390   :  { %1577 = vtanh.f32 %v1000_v20 }
0x1396   :  { %v1578_v21 = vpop.eup %1577 }
0x1397   :  { %1004 = vrot.lane.b32.xlu0 %v1578_v21, %s1688_s3  ;;  %v698_v8 = vpop.permute.xlu1 %697 }
0x1398   :  { %700 = vst.msk [vmem:[%s2194_s12] sm:$0xff] %vm109_vm0, %v698_v8  ;;  %1483 = vmatmul.msk.f32.vlgmr.msrb.gmra.mxu1 %vm109_vm0, %v698_v8 }
0x1399   :  { %1238 = vmatpush.msrb.mxu1 %v1988_v52  ;;  %v2091_v52 = vpop.f32.mrf.mxu1 }
0x139b   :  { %1239 = vmatpush.msrb.mxu1 %v1992_v42 }
0x139d   :  { %1240 = vmatpush.msrb.mxu1 %v1996_v53 }
0x139f   :  { %1241 = vmatpush.msrb.mxu1 %v2000_v54 }
0x1409   :  { %v1005_v22 = vpop.permute.xlu0 %1004 }
0x140a   :  { %v1007_v24 = vmul.f32 %v1005_v22, %v1002_v50 }
0x140c   :  { %v2086_v25 = vadd.f32 %v1008_v23, %v1007_v24 }
0x140e   :  { %1015 = vrot.lane.b32.xlu2 %v2086_v25, %s1688_s3 }
0x1415   :  { %v2093_v42 = vpop.f32.mrf.mxu1 }
0x1468   :  { %v1016_v26 = vpop.permute.xlu2 %1015 }
0x1469   :  { %1488 = vmatmul.msk.f32.vlgmr.msra.gmra.mxu1 %vm109_vm0, %v1016_v26 }
0x14e6   :  { %v1036_v53 = vpop.f32.mrf.mxu1 }
0x14e7   :  { %v1059_v54 = vadd.f32 %v1036_v53, %v2039_v46  ;;  %v1039_v27 = vadd.f32 %v1036_v53, %v774_v11 }
0x14e9   :  { %1061 = vrot.lane.b32.xlu0 %v1059_v54, %s1686_s17  ;;  %v1489_v28 = vmul.f32 -1.442695, %v1039_v27 }
0x14eb   :  { %1579 = vpow2.f32 %v1489_v28 }
0x14f1   :  { %v1580_v29 = vpop.eup %1579 }
0x14f2   :  { %v1043_v30 = vadd.f32 1.0, %v1580_v29 }
0x14f4   :  { %1581 = vrcp.f32 %v1043_v30  ;;  %v1055_v36 = vand.u32 2147483648, %v1043_v30  ;;  %vm1049_vm12 = vweird.f32 %v1043_v30  ;;  %v1053_v37 = vand.u32 2147483647, %v1043_v30 }
0x14f6   :  { %v1056_v39 = vor.u32 1.1754944e-38, %v1055_v36  ;;  %vm1054_vm14 = vcmp.eq.f32.partialorder %v1053_v37, 8.507059e+37 }
0x14fa   :  { %v1582_v31 = vpop.eup %1581 }
0x14fb   :  { %v1045_v32 = vmul.f32 %v1582_v31, %v1043_v30  ;;  %vm1050_vm11 = vweird.f32 %v1582_v31 }
0x14fc   :  { %vm1051_vm13 = vmor %vm1049_vm12, %vm1050_vm11 }
0x14fd   :  { %v1046_v34 = vsub.f32 1.0, %v1045_v32 }
0x14ff   :  { %v1047_v14 = vmul.f32 %v1582_v31, %v1046_v34 }
0x1501   :  { %v1048_v35 = vadd.f32 %v1582_v31, %v1047_v14 }
0x1503   :  { %v1052_v38 = vsel %vm1051_vm13, %v1582_v31, %v1048_v35 }
0x1504   :  { %v1057_v40 = vsel %vm1054_vm14, %v1056_v39, %v1052_v38 }
0x1505   :  { %v1071_v41 = vsub.f32 1.0, %v1057_v40  ;;  %v1077_v57 = vmul.f32 %v1057_v40, %v2086_v25 }
0x155b   :  { %v1062_v43 = vpop.permute.xlu0 %1061 }
0x155c   :  { %v1064_v49 = vmul.f32 %v1062_v43, %v1057_v40 }
0x155e   :  { %1066 = vrot.lane.b32.xlu1 %v1064_v49, %s1686_s17 }
0x15d0   :  { %v1067_v51 = vpop.permute.xlu1 %1066 }
0x15d1   :  { %v1069_v55 = vadd.f32 %v1067_v51, %v774_v11  ;;  %v814_v11 = vadd.f32 %v2046_v10, %v2091_v52 }
0x15d3   :  { %1583 = vtanh.f32 %v1069_v55 }
0x15d9   :  { %v1584_v56 = vpop.eup %1583 }
0x15da   :  { %1073 = vrot.lane.b32.xlu2 %v1584_v56, %s1688_s3 }
0x1634   :  { %v1074_v47 = vpop.permute.xlu2 %1073 }
0x1635   :  { %v1076_v58 = vmul.f32 %v1074_v47, %v1071_v41 }
0x1637   :  { %v2102_v59 = vadd.f32 %v1077_v57, %v1076_v58 }
0x1639   :  { %1084 = vrot.lane.b32.xlu0 %v2102_v59, %s1688_s3 }
0x16ab   :  { %v1085_v60 = vpop.permute.xlu0 %1084 }
0x16ac   :  { %1491 = vmatmul.msk.f32.vlgmr.msra.gmra.mxu2 %vm109_vm0, %v1085_v60 }
0x172f   :  { %v1105_v61 = vpop.f32.mrf.mxu2 }
0x1730   :  { %v1128_v62 = vadd.f32 %v1105_v61, %v2039_v46  ;;  %v1108_v0 = vadd.f32 %v1105_v61, %v794_v63 }
0x1732   :  { %1130 = vrot.lane.b32.xlu1 %v1128_v62, %s1686_s17  ;;  %v1492_v1 = vmul.f32 -1.442695, %v1108_v0 }
0x1734   :  { %1585 = vpow2.f32 %v1492_v1 }
0x173a   :  { %v1586_v2 = vpop.eup %1585 }
0x173b   :  { %v1112_v3 = vadd.f32 1.0, %v1586_v2 }
0x173d   :  { %1587 = vrcp.f32 %v1112_v3  ;;  %v1124_v12 = vand.u32 2147483648, %v1112_v3  ;;  %vm1118_vm1 = vweird.f32 %v1112_v3  ;;  %v1122_v13 = vand.u32 2147483647, %v1112_v3 }
0x173f   :  { %v1125_v16 = vor.u32 1.1754944e-38, %v1124_v12  ;;  %vm1123_vm3 = vcmp.eq.f32.partialorder %v1122_v13, 8.507059e+37 }
0x1743   :  { %v1588_v4 = vpop.eup %1587 }
0x1744   :  { %v1114_v5 = vmul.f32 %v1588_v4, %v1112_v3  ;;  %vm1119_vm15 = vweird.f32 %v1588_v4 }
0x1745   :  { %vm1120_vm2 = vmor %vm1118_vm1, %vm1119_vm15 }
0x1746   :  { %v1115_v6 = vsub.f32 1.0, %v1114_v5 }
0x1748   :  { %v1116_v7 = vmul.f32 %v1588_v4, %v1115_v6 }
0x174a   :  { %v1117_v9 = vadd.f32 %v1588_v4, %v1116_v7 }
0x174c   :  { %v1121_v15 = vsel %vm1120_vm2, %v1588_v4, %v1117_v9 }
0x174d   :  { %v1126_v17 = vsel %vm1123_vm3, %v1125_v16, %v1121_v15 }
0x174e   :  { %v1140_v8 = vsub.f32 1.0, %v1126_v17  ;;  %v1146_v22 = vmul.f32 %v1126_v17, %v2102_v59 }
0x17a4   :  { %v1131_v45 = vpop.permute.xlu1 %1130 }
0x17a5   :  { %v1133_v18 = vmul.f32 %v1131_v45, %v1126_v17 }
0x17a7   :  { %1135 = vrot.lane.b32.xlu2 %v1133_v18, %s1686_s17 }
0x1801   :  { %v1136_v19 = vpop.permute.xlu2 %1135 }
0x1802   :  { %v1138_v20 = vadd.f32 %v1136_v19, %v794_v63  ;;  %v834_v63 = vadd.f32 %v2046_v10, %v2037_v44 }
0x1804   :  { %1589 = vtanh.f32 %v1138_v20 }
0x180a   :  { %v1590_v21 = vpop.eup %1589 }
0x180b   :  { %1142 = vrot.lane.b32.xlu0 %v1590_v21, %s1688_s3 }
0x187d   :  { %v1143_v50 = vpop.permute.xlu0 %1142 }
0x187e   :  { %v1145_v23 = vmul.f32 %v1143_v50, %v1140_v8 }
0x1880   :  { %v2114_v24 = vadd.f32 %v1146_v22, %v1145_v23 }
0x1882   :  { %1153 = vrot.lane.b32.xlu1 %v2114_v24, %s1688_s3 }
0x18f4   :  { %v1154_v26 = vpop.permute.xlu1 %1153 }
0x18f5   :  { %1494 = vmatmul.msk.f32.vlgmr.msra.gmra.mxu3 %vm109_vm0, %v1154_v26 }
0x1978   :  { %v1174_v53 = vpop.f32.mrf.mxu3 }
0x1979   :  { %v1197_v54 = vadd.f32 %v1174_v53, %v2039_v46  ;;  %v1177_v27 = vadd.f32 %v1174_v53, %v814_v11 }
0x197b   :  { %1199 = vrot.lane.b32.xlu2 %v1197_v54, %s1686_s17  ;;  %v1495_v28 = vmul.f32 -1.442695, %v1177_v27 }
0x197d   :  { %1591 = vpow2.f32 %v1495_v28 }
0x1983   :  { %v1592_v29 = vpop.eup %1591 }
0x1984   :  { %v1181_v30 = vadd.f32 1.0, %v1592_v29 }
0x1986   :  { %1593 = vrcp.f32 %v1181_v30  ;;  %v1193_v36 = vand.u32 2147483648, %v1181_v30  ;;  %vm1187_vm5 = vweird.f32 %v1181_v30  ;;  %v1191_v37 = vand.u32 2147483647, %v1181_v30 }
0x1988   :  { %v1194_v39 = vor.u32 1.1754944e-38, %v1193_v36  ;;  %vm1192_vm7 = vcmp.eq.f32.partialorder %v1191_v37, 8.507059e+37 }
0x198c   :  { %v1594_v31 = vpop.eup %1593 }
0x198d   :  { %v1183_v32 = vmul.f32 %v1594_v31, %v1181_v30  ;;  %vm1188_vm4 = vweird.f32 %v1594_v31 }
0x198e   :  { %vm1189_vm6 = vmor %vm1187_vm5, %vm1188_vm4 }
0x198f   :  { %v1184_v34 = vsub.f32 1.0, %v1183_v32 }
0x1991   :  { %v1185_v14 = vmul.f32 %v1594_v31, %v1184_v34 }
0x1993   :  { %v1186_v35 = vadd.f32 %v1594_v31, %v1185_v14 }
0x1995   :  { %v1190_v38 = vsel %vm1189_vm6, %v1594_v31, %v1186_v35 }
0x1996   :  { %v1195_v43 = vsel %vm1192_vm7, %v1194_v39, %v1190_v38 }
0x1997   :  { %v1209_v56 = vsub.f32 1.0, %v1195_v43  ;;  %v1215_v47 = vmul.f32 %v1195_v43, %v2114_v24 }
0x19d5   :  { %v1200_v52 = vpop.permute.xlu2 %1199 }
0x19d6   :  { %v1202_v40 = vmul.f32 %v1200_v52, %v1195_v43 }
0x19d8   :  { %1204 = vrot.lane.b32.xlu0 %v1202_v40, %s1686_s17 }
0x1a4a   :  { %v1205_v49 = vpop.permute.xlu0 %1204 }
0x1a4b   :  { %v1207_v51 = vadd.f32 %v1205_v49, %v814_v11  ;;  %v854_v11 = vadd.f32 %v2046_v10, %v2066_v48 }
0x1a4d   :  { %1595 = vtanh.f32 %v1207_v51 }
0x1a53   :  { %v1596_v55 = vpop.eup %1595 }
0x1a54   :  { %1211 = vrot.lane.b32.xlu1 %v1596_v55, %s1688_s3 }
0x1ac6   :  { %v1212_v41 = vpop.permute.xlu1 %1211 }
0x1ac7   :  { %v1214_v57 = vmul.f32 %v1212_v41, %v1209_v56 }
0x1ac9   :  { %v2126_v58 = vadd.f32 %v1215_v47, %v1214_v57 }
0x1acb   :  { %1222 = vrot.lane.b32.xlu2 %v2126_v58, %s1688_s3 }
0x1b25   :  { %v1223_v60 = vpop.permute.xlu2 %1222 }
0x1b26   :  { %1497 = vmatmul.msk.f32.vlgmr.msrb.gmra.mxu1 %vm109_vm0, %v1223_v60 }
0x1ba3   :  { %v1243_v61 = vpop.f32.mrf.mxu1 }
0x1ba4   :  { %v1266_v62 = vadd.f32 %v1243_v61, %v2039_v46  ;;  %v1246_v0 = vadd.f32 %v1243_v61, %v834_v63 }
0x1ba6   :  { %1268 = vrot.lane.b32.xlu0 %v1266_v62, %s1686_s17  ;;  %v1498_v1 = vmul.f32 -1.442695, %v1246_v0 }
0x1ba8   :  { %1597 = vpow2.f32 %v1498_v1 }
0x1bae   :  { %v1598_v2 = vpop.eup %1597 }
0x1baf   :  { %v1250_v3 = vadd.f32 1.0, %v1598_v2 }
0x1bb1   :  { %1599 = vrcp.f32 %v1250_v3  ;;  %v1262_v12 = vand.u32 2147483648, %v1250_v3  ;;  %vm1256_vm9 = vweird.f32 %v1250_v3  ;;  %v1260_v13 = vand.u32 2147483647, %v1250_v3 }
0x1bb3   :  { %v1263_v16 = vor.u32 1.1754944e-38, %v1262_v12  ;;  %vm1261_vm11 = vcmp.eq.f32.partialorder %v1260_v13, 8.507059e+37 }
0x1bb7   :  { %v1600_v4 = vpop.eup %1599 }
0x1bb8   :  { %v1252_v5 = vmul.f32 %v1600_v4, %v1250_v3  ;;  %vm1257_vm8 = vweird.f32 %v1600_v4 }
0x1bb9   :  { %vm1258_vm10 = vmor %vm1256_vm9, %vm1257_vm8 }
0x1bba   :  { %v1253_v6 = vsub.f32 1.0, %v1252_v5 }
0x1bbc   :  { %v1254_v7 = vmul.f32 %v1600_v4, %v1253_v6 }
0x1bbe   :  { %v1255_v9 = vadd.f32 %v1600_v4, %v1254_v7 }
0x1bc0   :  { %v1259_v15 = vsel %vm1258_vm10, %v1600_v4, %v1255_v9 }
0x1bc1   :  { %v1264_v45 = vsel %vm1261_vm11, %v1263_v16, %v1259_v15 }
0x1bc2   :  { %v1278_v21 = vsub.f32 1.0, %v1264_v45  ;;  %v1284_v50 = vmul.f32 %v1264_v45, %v2126_v58 }
0x1c18   :  { %v1269_v44 = vpop.permute.xlu0 %1268 }
0x1c19   :  { %v1271_v17 = vmul.f32 %v1269_v44, %v1264_v45 }
0x1c1b   :  { %1273 = vrot.lane.b32.xlu1 %v1271_v17, %s1686_s17 }
0x1c8d   :  { %v1274_v18 = vpop.permute.xlu1 %1273 }
0x1c8e   :  { %v1276_v19 = vadd.f32 %v1274_v18, %v834_v63  ;;  %v876_v63 = vadd.f32 %v2046_v10, %v2093_v42  ;;  %v1011_v18 = vstv %s1487_s14 }
0x1c90   :  { %1601 = vtanh.f32 %v1276_v19  ;;  %v942_v19 = vstv %s941_s15 }
0x1c96   :  { %v1602_v20 = vpop.eup %1601 }
0x1c97   :  { %1280 = vrot.lane.b32.xlu2 %v1602_v20, %s1688_s3  ;;  %v1080_v20 = vstv %s1490_s1 }
0x1cf1   :  { %v1281_v8 = vpop.permute.xlu2 %1280 }
0x1cf2   :  { %v1283_v22 = vmul.f32 %v1281_v8, %v1278_v21  ;;  %v1012_v21 = vmul.f32 %v1011_v18, %v2086_v25  ;;  %v1149_v8 = vstv %s1493_s16 }
0x1cf4   :  { %v2138_v23 = vadd.f32 %v1284_v50, %v1283_v22  ;;  %v943_v50 = vmul.f32 %v942_v19, %v2054_v33  ;;  %v1081_v22 = vmul.f32 %v1080_v20, %v2102_v59 }
0x1cf6   :  { %1291 = vrot.lane.b32.xlu0 %v2138_v23, %s1688_s3 }
0x1d68   :  { %v1292_v26 = vpop.permute.xlu0 %1291 }
0x1d69   :  { %1500 = vmatmul.msk.f32.vlgmr.msrb.gmra.mxu2 %vm109_vm0, %v1292_v26  ;;  %v1218_v26 = vstv %s1496_s2 }
0x1dec   :  { %v1312_v53 = vpop.f32.mrf.mxu2 }
0x1ded   :  { %v1335_v54 = vadd.f32 %v1312_v53, %v2039_v46  ;;  %v1315_v27 = vadd.f32 %v1312_v53, %v854_v11  ;;  %v1013_v53 = vadd.f32 %v1012_v21, %v943_v50 }
0x1def   :  { %1337 = vrot.lane.b32.xlu1 %v1335_v54, %s1686_s17  ;;  %v1501_v28 = vmul.f32 -1.442695, %v1315_v27  ;;  %v1150_v54 = vmul.f32 %v1149_v8, %v2114_v24  ;;  %v1082_v27 = vadd.f32 %v1081_v22, %v1013_v53 }
0x1df1   :  { %1603 = vpow2.f32 %v1501_v28  ;;  %v1219_v28 = vmul.f32 %v1218_v26, %v2126_v58  ;;  %v1435_v58 = vstv %s2192_s10 }
0x1df7   :  { %v1604_v29 = vpop.eup %1603 }
0x1df8   :  { %v1319_v30 = vadd.f32 1.0, %v1604_v29  ;;  %v1356_v29 = vstv %s1502_s5 }
0x1dfa   :  { %1605 = vrcp.f32 %v1319_v30  ;;  %v1331_v36 = vand.u32 2147483648, %v1319_v30  ;;  %vm1325_vm13 = vweird.f32 %v1319_v30  ;;  %v1329_v37 = vand.u32 2147483647, %v1319_v30 }
0x1dfc   :  { %v1332_v39 = vor.u32 1.1754944e-38, %v1331_v36  ;;  %vm1330_vm15 = vcmp.eq.f32.partialorder %v1329_v37, 8.507059e+37 }
0x1e00   :  { %v1606_v31 = vpop.eup %1605 }
0x1e01   :  { %v1321_v32 = vmul.f32 %v1606_v31, %v1319_v30  ;;  %vm1326_vm12 = vweird.f32 %v1606_v31  ;;  %v1151_v30 = vadd.f32 %v1150_v54, %v1082_v27 }
0x1e02   :  { %vm1327_vm14 = vmor %vm1325_vm13, %vm1326_vm12 }
0x1e03   :  { %v1322_v34 = vsub.f32 1.0, %v1321_v32 }
0x1e05   :  { %v1323_v14 = vmul.f32 %v1606_v31, %v1322_v34  ;;  %v1220_v34 = vadd.f32 %v1219_v28, %v1151_v30 }
0x1e07   :  { %v1324_v35 = vadd.f32 %v1606_v31, %v1323_v14 }
0x1e09   :  { %v1328_v38 = vsel %vm1327_vm14, %v1606_v31, %v1324_v35 }
0x1e0a   :  { %v1333_v52 = vsel %vm1330_vm15, %v1332_v39, %v1328_v38 }
0x1e0b   :  { %v1347_v55 = vsub.f32 1.0, %v1333_v52  ;;  %v1353_v41 = vmul.f32 %v1333_v52, %v2138_v23 }
0x1e61   :  { %v1338_v48 = vpop.permute.xlu1 %1337 }
0x1e62   :  { %v1340_v43 = vmul.f32 %v1338_v48, %v1333_v52 }
0x1e64   :  { %1342 = vrot.lane.b32.xlu2 %v1340_v43, %s1686_s17 }
0x1ebe   :  { %v1343_v40 = vpop.permute.xlu2 %1342 }
0x1ebf   :  { %v1345_v49 = vadd.f32 %v1343_v40, %v854_v11  ;;  %v1287_v11 = vstv %s1499_s4 }
0x1ec0   :  { %v1288_v31 = vmul.f32 %v1287_v11, %v2138_v23 }
0x1ec1   :  { %1607 = vtanh.f32 %v1345_v49 }
0x1ec2   :  { %v1289_v36 = vadd.f32 %v1288_v31, %v1220_v34 }
0x1ec7   :  { %v1608_v51 = vpop.eup %1607 }
0x1ec8   :  { %1349 = vrot.lane.b32.xlu0 %v1608_v51, %s1688_s3 }
0x1f3a   :  { %v1350_v56 = vpop.permute.xlu0 %1349 }
0x1f3b   :  { %v1352_v47 = vmul.f32 %v1350_v56, %v1347_v55 }
0x1f3d   :  { %v2150_v57 = vadd.f32 %v1353_v41, %v1352_v47 }
0x1f3f   :  { %1360 = vrot.lane.b32.xlu1 %v2150_v57, %s1688_s3  ;;  %v1357_v33 = vmul.f32 %v1356_v29, %v2150_v57 }
0x1f41   :  { %v1358_v38 = vadd.f32 %v1357_v33, %v1289_v36 }
0x1fb1   :  { %v1361_v60 = vpop.permute.xlu1 %1360 }
0x1fb2   :  { %1503 = vmatmul.msk.f32.vlgmr.msrb.gmra.mxu3 %vm109_vm0, %v1361_v60 }
0x2035   :  { %v1381_v61 = vpop.f32.mrf.mxu3 }
0x2036   :  { %v1404_v62 = vadd.f32 %v1381_v61, %v2039_v46  ;;  %v1384_v0 = vadd.f32 %v1381_v61, %v876_v63 }
0x2038   :  { %1406 = vrot.lane.b32.xlu2 %v1404_v62, %s1686_s17  ;;  %v1504_v1 = vmul.f32 -1.442695, %v1384_v0 }
0x203a   :  { %1609 = vpow2.f32 %v1504_v1 }
0x2040   :  { %v1610_v2 = vpop.eup %1609 }
0x2041   :  { %v1388_v3 = vadd.f32 1.0, %v1610_v2 }
0x2043   :  { %1611 = vrcp.f32 %v1388_v3  ;;  %v1400_v12 = vand.u32 2147483648, %v1388_v3  ;;  %vm1394_vm2 = vweird.f32 %v1388_v3  ;;  %v1398_v46 = vand.u32 2147483647, %v1388_v3 }
0x2045   :  { %v1401_v15 = vor.u32 1.1754944e-38, %v1400_v12  ;;  %vm1399_vm4 = vcmp.eq.f32.partialorder %v1398_v46, 8.507059e+37 }
0x2049   :  { %v1612_v4 = vpop.eup %1611 }
0x204a   :  { %v1390_v5 = vmul.f32 %v1612_v4, %v1388_v3  ;;  %vm1395_vm1 = vweird.f32 %v1612_v4 }
0x204b   :  { %vm1396_vm3 = vmor %vm1394_vm2, %vm1395_vm1 }
0x204c   :  { %v1391_v6 = vsub.f32 1.0, %v1390_v5 }
0x204e   :  { %v1392_v7 = vmul.f32 %v1612_v4, %v1391_v6 }
0x2050   :  { %v1393_v9 = vadd.f32 %v1612_v4, %v1392_v7 }
0x2052   :  { %v1397_v13 = vsel %vm1396_vm3, %v1612_v4, %v1393_v9 }
0x2053   :  { %v1402_v42 = vsel %vm1399_vm4, %v1401_v15, %v1397_v13 }
0x2054   :  { %v1416_v32 = vsub.f32 1.0, %v1402_v42  ;;  %v1422_v59 = vmul.f32 %v1402_v42, %v2150_v57 }
0x2092   :  { %v1407_v10 = vpop.permute.xlu2 %1406 }
0x2093   :  { %v1409_v16 = vmul.f32 %v1407_v10, %v1402_v42 }
0x2095   :  { %1411 = vrot.lane.b32.xlu0 %v1409_v16, %s1686_s17  ;;  %s1505_s17 = sld [smem:[#allocation8 + $0x7]] }
0x209b   :  { %v1425_v35 = vstv %s1505_s17 }
0x2107   :  { %v1412_v44 = vpop.permute.xlu0 %1411 }
0x2108   :  { %v1414_v45 = vadd.f32 %v1412_v44, %v876_v63 }
0x210a   :  { %1613 = vtanh.f32 %v1414_v45 }
0x2110   :  { %v1614_v17 = vpop.eup %1613 }
0x2111   :  { %1418 = vrot.lane.b32.xlu1 %v1614_v17, %s1688_s3 }
0x2183   :  { %v1419_v25 = vpop.permute.xlu1 %1418 }
0x2184   :  { %v1421_v14 = vmul.f32 %v1419_v25, %v1416_v32 }
0x2186   :  { %v1423_v37 = vadd.f32 %v1422_v59, %v1421_v14 }
0x2188   :  { %v1426_v24 = vmul.f32 %v1425_v35, %v1423_v37  ;;  %1429 = vrot.lane.b32.xlu2 %v1423_v37, %s1688_s3 }
0x218a   :  { %v1427_v23 = vadd.f32 %v1426_v24, %v1358_v38 }
0x218c   :  { %v1436_v39 = vadd.f32 %v1435_v58, %v1427_v23 }
0x218e   :  { %1438 = vrot.lane.b32.xlu0 %v1436_v39, %s1688_s3 }
0x21e2   :  { %v1430_v48 = vpop.permute.xlu2 %1429 }
0x21e3   :  { %1506 = vst.msk [vmem:[%s2194_s12 + $0x8] sm:$0xff] %vm109_vm0, %v1430_v48 }
0x2200   :  { %v1439_v52 = vpop.permute.xlu0 %1438 }
0x2201   :  { %1441 = vst.msk [vmem:[%s2193_s11] sm:$0xff] %vm109_vm0, %v1439_v52 }
0x2202   :  { %1450 = vsyncpa [#allocation4], 1 }
0x2203   :  { %1451 = vsyncpa [#allocation7], 1 }
0x2204   :  { %1452 = vsyncpa [#allocation5], 1 }

</bundles_post_ra>
